<compile_context>
chip_gen: v7x
topology: tpu7x:2x2x1
jax: 0.10.0
libtpu: 0.0.40
codegen_flags: <defaults>
</compile_context>

<pallas_src>
import functools
import numpy as np
import jax
import jax.numpy as jnp
from jax.experimental import pallas as pl
from jax.experimental.pallas import tpu as pltpu


NEG_INF = np.float32(-1e18)


def _layer_norm(v, gain, bias, approx, eps=1e-6):
    # Matches the reference LayerNormalization:
    #   mean over last dim, torch.std (unbiased, N-1), divide by (std + eps).
    mean = jnp.mean(v, axis=-1, keepdims=True)
    var = jnp.sum((v - mean) ** 2, axis=-1, keepdims=True) / (v.shape[-1] - 1)
    std = jnp.sqrt(var)
    if approx:
        return gain * (v - mean) * pl.reciprocal(std + eps, approx=True) + bias
    return gain * (v - mean) / (std + eps) + bias


def encoder_layer_kernel(approx_recip,
                         x_ref, mask_ref,
                         wq_ref, bq_ref, wk_ref, bk_ref, wv_ref, bv_ref,
                         wo_ref, bo_ref, g1_ref, beta1_ref,
                         w1_ref, b1_ref, w2_ref, b2_ref,
                         g2_ref, beta2_ref,
                         out_ref, acc_ref):
    h = pl.program_id(1)
    num_heads = pl.num_programs(1)
    Bb, S, D = x_ref.shape
    dh = wq_ref.shape[2]
    scale = np.float32(1.0 / np.sqrt(dh))
    cdt = x_ref.dtype                       # dtype fed to the MXU

    x2 = x_ref[...].reshape(Bb * S, D)      # (rows, D); rows = (batch, seq)

    # --- this head's Q/K/V projections: lane-dense (D, dh) weight tiles -----
    q = jnp.dot(x2, wq_ref[0], preferred_element_type=jnp.float32) \
        + bq_ref[0].astype(jnp.float32)
    k = jnp.dot(x2, wk_ref[0], preferred_element_type=jnp.float32) \
        + bk_ref[0].astype(jnp.float32)
    v = jnp.dot(x2, wv_ref[0], preferred_element_type=jnp.float32) \
        + bv_ref[0].astype(jnp.float32)

    qh = q.reshape(Bb, S, dh).astype(cdt)
    kh = k.reshape(Bb, S, dh).astype(cdt)
    vh = v.reshape(Bb, S, dh).astype(cdt)

    # --- scaled dot-product attention, batched over the Bb batch block ------
    scores = jnp.einsum("bqd,bkd->bqk", qh, kh,
                        preferred_element_type=jnp.float32) * scale
    # int8 mask, 1 == masked; applied once per head step (masked_fill semantics)
    masked = mask_ref[...].astype(jnp.float32) > 0.5
    scores = jnp.where(masked, NEG_INF, scores)

    m = jnp.max(scores, axis=-1, keepdims=True)       # f32 statistics
    e = jnp.exp(scores - m)
    denom = jnp.sum(e, axis=-1, keepdims=True)
    if approx_recip:
        p = e * pl.reciprocal(denom, approx=True)     # EUP reciprocal
    else:
        p = e / denom

    ctx = jnp.einsum("bqk,bkd->bqd", p.astype(cdt), vh,
                     preferred_element_type=jnp.float32)
    ctx2 = ctx.reshape(Bb * S, dh).astype(cdt)

    # context_h @ Wo_h summed over heads == concat_h(context_h) @ Wo
    head_out = jnp.dot(ctx2, wo_ref[0], preferred_element_type=jnp.float32)

    @pl.when(h == 0)
    def _init():
        acc_ref[...] = jnp.zeros_like(acc_ref)

    acc_ref[...] += head_out

    # --- last head: residual + LN1, pointwise FFN, residual + LN2 -----------
    @pl.when(h == num_heads - 1)
    def _finalize():
        xf = x2.astype(jnp.float32)
        attn_out = acc_ref[...] + bo_ref[...].astype(jnp.float32)
        y = _layer_norm(attn_out + xf,
                        g1_ref[...].astype(jnp.float32),
                        beta1_ref[...].astype(jnp.float32), approx_recip)
        # FFN: Linear -> (Dropout=id) -> ReLU -> Linear -> (Dropout=id)
        h1 = jnp.dot(y.astype(cdt), w1_ref[...],
                     preferred_element_type=jnp.float32) \
             + b1_ref[...].astype(jnp.float32)
        h1 = jnp.maximum(h1, 0.0)
        ffn = jnp.dot(h1.astype(cdt), w2_ref[...],
                      preferred_element_type=jnp.float32) \
              + b2_ref[...].astype(jnp.float32)
        z = _layer_norm(ffn + y,
                        g2_ref[...].astype(jnp.float32),
                        beta2_ref[...].astype(jnp.float32), approx_recip)
        out_ref[...] = z.reshape(Bb, S, D).astype(out_ref.dtype)


def transformer_encoder_layer(x, mask, params, heads_count, *,
                              block_batch=None, compute_dtype=None,
                              approx_recip=True):
    B, S, D = x.shape
    H = heads_count
    assert D % H == 0
    dh = D // H
    d_ff = params["w1"].shape[1]

    if compute_dtype is not None and x.dtype != compute_dtype:
        x = x.astype(compute_dtype)
        params = {kk: vv.astype(compute_dtype) for kk, vv in params.items()}
    dt = x.dtype
    isz = jnp.dtype(dt).itemsize

    # One-time layout plumbing in plain XLA: split Q/K/V columns and Wo rows
    # per head so each head's weight tile arrives lane-dense in the kernel.
    def split_cols(w):     # (D, H*dh) -> (H, D, dh)
        return w.reshape(D, H, dh).transpose(1, 0, 2)

    def split_bias(b):     # (1, H*dh) -> (H, 1, dh)
        return b.reshape(H, dh)[:, None, :]

    wq_h = split_cols(params["wq"]); bq_h = split_bias(params["bq"])
    wk_h = split_cols(params["wk"]); bk_h = split_bias(params["bk"])
    wv_h = split_cols(params["wv"]); bv_h = split_bias(params["bv"])
    wo_h = params["wo"].reshape(H, dh, D)

    mask_i8 = mask.astype(jnp.int8)          # 1 == masked (torch bool True)

    if block_batch is None:
        block_batch = max(1, min(B, pl.cdiv(256, S)))   # aim >= 256 rows/step
    Bb = int(block_batch)
    grid = (pl.cdiv(B, Bb), H)

    kernel = functools.partial(encoder_layer_kernel, approx_recip)

    def batch_spec(shape):
        return pl.BlockSpec(shape, lambda bb, h: (bb,) + (0,) * (len(shape) - 1))

    def head_spec(shape):
        return pl.BlockSpec(shape, lambda bb, h: (h,) + (0,) * (len(shape) - 1))

    def const_spec(shape, single_buffer):
        imap = lambda bb, h: (0,) * len(shape)
        if single_buffer:
            return pl.BlockSpec(shape, imap, pipeline_mode=pl.Buffered(1))
        return pl.BlockSpec(shape, imap)

    # rough VMEM footprint -> explicit limit (clamped to [32 MiB, 64 MiB])
    per_step = (2 * Bb * S * D * isz           # x block (double buffered)
                + 2 * Bb * S * S               # int8 mask block
                + 2 * Bb * S * D * isz         # output block
                + 2 * (4 * D * dh + 3 * dh) * isz)   # per-head weight blocks
    const_w = (D * d_ff + d_ff * D + d_ff + 7 * D) * isz
    interm = (3 * Bb * S * dh + 3 * Bb * S * S + Bb * S * d_ff
              + 6 * Bb * S * D) * 4
    est = per_step + 2 * const_w + Bb * S * D * 4 + 2 * interm
    vmem_limit = int(min(max(4 * est, 32 * 2**20), 64 * 2**20))

    operands = (x, mask_i8,
                wq_h, bq_h, wk_h, bk_h, wv_h, bv_h,
                wo_h, params["bo"], params["g1"], params["beta1"],
                params["w1"], params["b1"], params["w2"], params["b2"],
                params["g2"], params["beta2"])

    def build(single_buffer):
        cs = lambda shape: const_spec(shape, single_buffer)
        in_specs = [
            batch_spec((Bb, S, D)),                       # x
            batch_spec((Bb, S, S)),                       # mask (int8)
            head_spec((1, D, dh)), head_spec((1, 1, dh)),  # wq, bq
            head_spec((1, D, dh)), head_spec((1, 1, dh)),  # wk, bk
            head_spec((1, D, dh)), head_spec((1, 1, dh)),  # wv, bv
            head_spec((1, dh, D)),                         # wo
            cs((1, D)), cs((1, D)), cs((1, D)),            # bo, g1, beta1
            cs((D, d_ff)), cs((1, d_ff)),                  # w1, b1
            cs((d_ff, D)), cs((1, D)),                     # w2, b2
            cs((1, D)), cs((1, D)),                        # g2, beta2
        ]
        out_spec = batch_spec((Bb, S, D))
        return pl.pallas_call(
            kernel,
            out_shape=jax.ShapeDtypeStruct((B, S, D), dt),
            grid_spec=pltpu.PrefetchScalarGridSpec(
                num_scalar_prefetch=0,
                grid=grid,
                in_specs=in_specs,
                out_specs=out_spec,
                scratch_shapes=[pltpu.VMEM((Bb * S, D), jnp.float32)],
            ),
            compiler_params=pltpu.CompilerParams(
                dimension_semantics=("parallel", "arbitrary"),
                vmem_limit_bytes=vmem_limit,
            ),
        )(*operands)

    try:
        # single-buffer the grid-constant weights (halves their VMEM footprint)
        return jax.block_until_ready(build(True))
    except Exception:
        # pipeline_mode=pl.Buffered(1) not supported on this jax/libtpu;
        # fall back to default double buffering.
        return build(False)


# ------------------------- pure-JAX reference -------------------------
def reference_encoder_layer(x, mask, params, heads_count):
    B, S, D = x.shape
    d_head = D // heads_count

    def ln(v, gain, bias, eps=1e-6):
        mean = jnp.mean(v, axis=-1, keepdims=True)
        var = jnp.sum((v - mean) ** 2, axis=-1, keepdims=True) / (v.shape[-1] - 1)
        return gain * (v - mean) / (jnp.sqrt(var) + eps) + bias

    q = x @ params["wq"] + params["bq"]
    k = x @ params["wk"] + params["bk"]
    v = x @ params["wv"] + params["bv"]

    def heads(t):
        return t.reshape(B, S, heads_count, d_head).transpose(0, 2, 1, 3)

    qh, kh, vh = heads(q), heads(k), heads(v)
    scores = jnp.einsum("bhqd,bhkd->bhqk", qh, kh) / np.sqrt(d_head)
    scores = jnp.where(mask[:, None, :, :] > 0.5, -1e18, scores)
    attn = jax.nn.softmax(scores, axis=-1)
    ctx = jnp.einsum("bhqk,bhkd->bhqd", attn, vh)
    ctx = ctx.transpose(0, 2, 1, 3).reshape(B, S, D)
    attn_out = ctx @ params["wo"] + params["bo"]
    y = ln(attn_out + x, params["g1"], params["beta1"])
    h1 = jnp.maximum(y @ params["w1"] + params["b1"], 0.0)
    ffn = h1 @ params["w2"] + params["b2"]
    return ln(ffn + y, params["g2"], params["beta2"])


if __name__ == "__main__":
    B, S, D, H, D_FF = 2, 8, 32, 4, 64

    key = jax.random.PRNGKey(0)
    keys = jax.random.split(key, 12)

    def w(k_, shape, scale=0.1):
        return (scale * jax.random.normal(k_, shape)).astype(jnp.float32)

    params = {
        "wq": w(keys[0], (D, D)), "bq": w(keys[1], (1, D)),
        "wk": w(keys[2], (D, D)), "bk": w(keys[3], (1, D)),
        "wv": w(keys[4], (D, D)), "bv": w(keys[5], (1, D)),
        "wo": w(keys[6], (D, D)), "bo": w(keys[7], (1, D)),
        "g1": jnp.ones((1, D), jnp.float32), "beta1": jnp.zeros((1, D), jnp.float32),
        "w1": w(keys[8], (D, D_FF)), "b1": w(keys[9], (1, D_FF)),
        "w2": w(keys[10], (D_FF, D)), "b2": w(keys[11], (1, D)),
        "g2": jnp.ones((1, D), jnp.float32), "beta2": jnp.zeros((1, D), jnp.float32),
    }

    x = jax.random.normal(jax.random.PRNGKey(42), (B, S, D), jnp.float32)

    # mask[b, q, kpos] = True if kpos >= valid_len[b]  (True == masked, torch bool)
    valid_len = jnp.array([S, S - 2], dtype=jnp.int32)
    key_idx = jnp.arange(S)[None, None, :]
    mask = jnp.broadcast_to(key_idx >= valid_len[:, None, None], (B, S, S))

    ref = reference_encoder_layer(x, mask.astype(jnp.float32), params, H)
    ref_np = np.asarray(ref)

    # exact-math path (f32, true division): tight correctness check
    out = transformer_encoder_layer(x, mask, params, H, approx_recip=False)
    out = jax.block_until_ready(out)
    np.testing.assert_allclose(np.asarray(out), ref_np, rtol=2e-5, atol=2e-5)

    # fast path: EUP approximate reciprocal for softmax + LayerNorm
    out_fast = transformer_encoder_layer(x, mask, params, H, approx_recip=True)
    out_fast = jax.block_until_ready(out_fast)
    np.testing.assert_allclose(np.asarray(out_fast), ref_np, rtol=2e-2, atol=2e-2)

    # bf16 MXU path (bf16 weights/activations, f32 accumulation + f32 stats)
    out_bf16 = transformer_encoder_layer(x, mask, params, H,
                                         compute_dtype=jnp.bfloat16)
    out_bf16 = jax.block_until_ready(out_bf16)
    np.testing.assert_allclose(np.asarray(jnp.asarray(out_bf16, jnp.float32)),
                               ref_np, rtol=5e-2, atol=5e-2)

    print("KERNEL_OK")
</pallas_src>

<mosaic_0001>
module attributes {stable_mosaic.version = 11 : i64} {
  func.func @encoder_layer_kernel(%arg0: i32, %arg1: i32, %arg2: memref<2x8x32xf32, #tpu.memory_space<vmem>>, %arg3: memref<2x8x8xi8, #tpu.memory_space<vmem>>, %arg4: memref<1x32x8xf32, #tpu.memory_space<vmem>>, %arg5: memref<1x1x8xf32, #tpu.memory_space<vmem>>, %arg6: memref<1x32x8xf32, #tpu.memory_space<vmem>>, %arg7: memref<1x1x8xf32, #tpu.memory_space<vmem>>, %arg8: memref<1x32x8xf32, #tpu.memory_space<vmem>>, %arg9: memref<1x1x8xf32, #tpu.memory_space<vmem>>, %arg10: memref<1x8x32xf32, #tpu.memory_space<vmem>>, %arg11: memref<1x32xf32, #tpu.memory_space<vmem>>, %arg12: memref<1x32xf32, #tpu.memory_space<vmem>>, %arg13: memref<1x32xf32, #tpu.memory_space<vmem>>, %arg14: memref<32x64xf32, #tpu.memory_space<vmem>>, %arg15: memref<1x64xf32, #tpu.memory_space<vmem>>, %arg16: memref<64x32xf32, #tpu.memory_space<vmem>>, %arg17: memref<1x32xf32, #tpu.memory_space<vmem>>, %arg18: memref<1x32xf32, #tpu.memory_space<vmem>>, %arg19: memref<1x32xf32, #tpu.memory_space<vmem>>, %arg20: memref<2x8x32xf32, #tpu.memory_space<vmem>>, %arg21: memref<16x32xf32, #tpu.memory_space<vmem>>) attributes {dimension_semantics = [#tpu.dimension_semantics<parallel>, #tpu.dimension_semantics<arbitrary>], iteration_bounds = array<i64: 1, 4>, scalar_prefetch = 0 : i64, scratch_operands = 1 : i64, tpu.core_type = #tpu.core_type<tc>, window_params = [{transform_indices = @transform_0, window_bounds = array<i64: 2, 8, 32>}, {transform_indices = @transform_1, window_bounds = array<i64: 2, 8, 8>}, {transform_indices = @transform_2, window_bounds = array<i64: 1, 32, 8>}, {transform_indices = @transform_3, window_bounds = array<i64: 1, 1, 8>}, {transform_indices = @transform_4, window_bounds = array<i64: 1, 32, 8>}, {transform_indices = @transform_5, window_bounds = array<i64: 1, 1, 8>}, {transform_indices = @transform_6, window_bounds = array<i64: 1, 32, 8>}, {transform_indices = @transform_7, window_bounds = array<i64: 1, 1, 8>}, {transform_indices = @transform_8, window_bounds = array<i64: 1, 8, 32>}, {pipeline_mode = #tpu.pipeline_mode<synchronous>, transform_indices = @transform_9, window_bounds = array<i64: 1, 32>}, {pipeline_mode = #tpu.pipeline_mode<synchronous>, transform_indices = @transform_10, window_bounds = array<i64: 1, 32>}, {pipeline_mode = #tpu.pipeline_mode<synchronous>, transform_indices = @transform_11, window_bounds = array<i64: 1, 32>}, {pipeline_mode = #tpu.pipeline_mode<synchronous>, transform_indices = @transform_12, window_bounds = array<i64: 32, 64>}, {pipeline_mode = #tpu.pipeline_mode<synchronous>, transform_indices = @transform_13, window_bounds = array<i64: 1, 64>}, {pipeline_mode = #tpu.pipeline_mode<synchronous>, transform_indices = @transform_14, window_bounds = array<i64: 64, 32>}, {pipeline_mode = #tpu.pipeline_mode<synchronous>, transform_indices = @transform_15, window_bounds = array<i64: 1, 32>}, {pipeline_mode = #tpu.pipeline_mode<synchronous>, transform_indices = @transform_16, window_bounds = array<i64: 1, 32>}, {pipeline_mode = #tpu.pipeline_mode<synchronous>, transform_indices = @transform_17, window_bounds = array<i64: 1, 32>}, {transform_indices = @transform_18, window_bounds = array<i64: 2, 8, 32>}]} {
    %c0 = arith.constant 0 : index
    %c0_0 = arith.constant 0 : index
    %c0_1 = arith.constant 0 : index
    %0 = vector.load %arg2[%c0, %c0_0, %c0_1] : memref<2x8x32xf32, #tpu.memory_space<vmem>>, vector<2x8x32xf32>
    %1 = vector.shape_cast %0 : vector<2x8x32xf32> to vector<16x32xf32>
    %c0_2 = arith.constant 0 : index
    %c0_3 = arith.constant 0 : index
    %c0_4 = arith.constant 0 : index
    %2 = vector.load %arg4[%c0_2, %c0_3, %c0_4] : memref<1x32x8xf32, #tpu.memory_space<vmem>>, vector<1x32x8xf32>
    %3 = vector.shape_cast %2 : vector<1x32x8xf32> to vector<32x8xf32>
    %cst = arith.constant dense<0.000000e+00> : vector<16x8xf32>
    %4 = tpu.matmul %1, %3, %cst {dimension_numbers = #tpu.dot_dimension_numbers<[1], [0], [0], [1], [0, 0, 1, 1], [], []>} : vector<16x32xf32>, vector<32x8xf32>, vector<16x8xf32> -> vector<16x8xf32>
    %c0_5 = arith.constant 0 : index
    %c0_6 = arith.constant 0 : index
    %c0_7 = arith.constant 0 : index
    %5 = vector.load %arg5[%c0_5, %c0_6, %c0_7] : memref<1x1x8xf32, #tpu.memory_space<vmem>>, vector<1x1x8xf32>
    %6 = vector.shape_cast %5 : vector<1x1x8xf32> to vector<1x8xf32>
    %7 = vector.broadcast %6 : vector<1x8xf32> to vector<16x8xf32>
    %8 = arith.addf %4, %7 : vector<16x8xf32>
    %c0_8 = arith.constant 0 : index
    %c0_9 = arith.constant 0 : index
    %c0_10 = arith.constant 0 : index
    %9 = vector.load %arg6[%c0_8, %c0_9, %c0_10] : memref<1x32x8xf32, #tpu.memory_space<vmem>>, vector<1x32x8xf32>
    %10 = vector.shape_cast %9 : vector<1x32x8xf32> to vector<32x8xf32>
    %cst_11 = arith.constant dense<0.000000e+00> : vector<16x8xf32>
    %11 = tpu.matmul %1, %10, %cst_11 {dimension_numbers = #tpu.dot_dimension_numbers<[1], [0], [0], [1], [0, 0, 1, 1], [], []>} : vector<16x32xf32>, vector<32x8xf32>, vector<16x8xf32> -> vector<16x8xf32>
    %c0_12 = arith.constant 0 : index
    %c0_13 = arith.constant 0 : index
    %c0_14 = arith.constant 0 : index
    %12 = vector.load %arg7[%c0_12, %c0_13, %c0_14] : memref<1x1x8xf32, #tpu.memory_space<vmem>>, vector<1x1x8xf32>
    %13 = vector.shape_cast %12 : vector<1x1x8xf32> to vector<1x8xf32>
    %14 = vector.broadcast %13 : vector<1x8xf32> to vector<16x8xf32>
    %15 = arith.addf %11, %14 : vector<16x8xf32>
    %c0_15 = arith.constant 0 : index
    %c0_16 = arith.constant 0 : index
    %c0_17 = arith.constant 0 : index
    %16 = vector.load %arg8[%c0_15, %c0_16, %c0_17] : memref<1x32x8xf32, #tpu.memory_space<vmem>>, vector<1x32x8xf32>
    %17 = vector.shape_cast %16 : vector<1x32x8xf32> to vector<32x8xf32>
    %cst_18 = arith.constant dense<0.000000e+00> : vector<16x8xf32>
    %18 = tpu.matmul %1, %17, %cst_18 {dimension_numbers = #tpu.dot_dimension_numbers<[1], [0], [0], [1], [0, 0, 1, 1], [], []>} : vector<16x32xf32>, vector<32x8xf32>, vector<16x8xf32> -> vector<16x8xf32>
    %c0_19 = arith.constant 0 : index
    %c0_20 = arith.constant 0 : index
    %c0_21 = arith.constant 0 : index
    %19 = vector.load %arg9[%c0_19, %c0_20, %c0_21] : memref<1x1x8xf32, #tpu.memory_space<vmem>>, vector<1x1x8xf32>
    %20 = vector.shape_cast %19 : vector<1x1x8xf32> to vector<1x8xf32>
    %21 = vector.broadcast %20 : vector<1x8xf32> to vector<16x8xf32>
    %22 = arith.addf %18, %21 : vector<16x8xf32>
    %23 = vector.shape_cast %8 : vector<16x8xf32> to vector<2x8x8xf32>
    %24 = vector.shape_cast %15 : vector<16x8xf32> to vector<2x8x8xf32>
    %25 = vector.shape_cast %22 : vector<16x8xf32> to vector<2x8x8xf32>
    "tpu.trace_start"() <{level = 10 : i32, message = "bqd,bkd->bqk"}> : () -> ()
    %cst_22 = arith.constant dense<0.000000e+00> : vector<2x8x8xf32>
    %26 = tpu.matmul %23, %24, %cst_22 {dimension_numbers = #tpu.dot_dimension_numbers<[2], [2], [1], [1], [0, 0, 0, 1, 1, 1], [0], [0]>} : vector<2x8x8xf32>, vector<2x8x8xf32>, vector<2x8x8xf32> -> vector<2x8x8xf32>
    "tpu.trace_stop"() : () -> ()
    %cst_23 = arith.constant 0.353553385 : f32
    %27 = vector.broadcast %cst_23 : f32 to vector<2x8x8xf32>
    %28 = arith.mulf %26, %27 : vector<2x8x8xf32>
    %c0_24 = arith.constant 0 : index
    %c0_25 = arith.constant 0 : index
    %c0_26 = arith.constant 0 : index
    %29 = vector.load %arg3[%c0_24, %c0_25, %c0_26] : memref<2x8x8xi8, #tpu.memory_space<vmem>>, vector<2x8x8xi8>
    %30 = arith.sitofp %29 : vector<2x8x8xi8> to vector<2x8x8xf32>
    %cst_27 = arith.constant 5.000000e-01 : f32
    %31 = vector.broadcast %cst_27 : f32 to vector<2x8x8xf32>
    %32 = arith.cmpf ogt, %30, %31 : vector<2x8x8xf32>
    %cst_28 = arith.constant -9.99999984E+17 : f32
    %33 = vector.broadcast %cst_28 : f32 to vector<2x8x8xf32>
    %34 = arith.select %32, %33, %28 : vector<2x8x8xi1>, vector<2x8x8xf32>
    %cst_29 = arith.constant dense<0xFF800000> : vector<2x8xf32>
    %35 = vector.multi_reduction <maximumf>, %34, %cst_29 [2] : vector<2x8x8xf32> to vector<2x8xf32>
    %36 = vector.shape_cast %35 : vector<2x8xf32> to vector<2x8x1xf32>
    %37 = vector.broadcast %36 : vector<2x8x1xf32> to vector<2x8x8xf32>
    %38 = arith.subf %34, %37 : vector<2x8x8xf32>
    %39 = math.exp %38 : vector<2x8x8xf32>
    %cst_30 = arith.constant dense<0.000000e+00> : vector<2x8xf32>
    %40 = vector.multi_reduction <add>, %39, %cst_30 [2] : vector<2x8x8xf32> to vector<2x8xf32>
    %41 = vector.shape_cast %40 : vector<2x8xf32> to vector<2x8x1xf32>
    %42 = vector.broadcast %41 : vector<2x8x1xf32> to vector<2x8x8xf32>
    %43 = arith.divf %39, %42 : vector<2x8x8xf32>
    "tpu.trace_start"() <{level = 10 : i32, message = "bqk,bkd->bqd"}> : () -> ()
    %cst_31 = arith.constant dense<0.000000e+00> : vector<2x8x8xf32>
    %44 = tpu.matmul %43, %25, %cst_31 {dimension_numbers = #tpu.dot_dimension_numbers<[2], [1], [1], [2], [0, 0, 0, 1, 1, 2], [0], [0]>} : vector<2x8x8xf32>, vector<2x8x8xf32>, vector<2x8x8xf32> -> vector<2x8x8xf32>
    "tpu.trace_stop"() : () -> ()
    %45 = vector.shape_cast %44 : vector<2x8x8xf32> to vector<16x8xf32>
    %c0_32 = arith.constant 0 : index
    %c0_33 = arith.constant 0 : index
    %c0_34 = arith.constant 0 : index
    %46 = vector.load %arg10[%c0_32, %c0_33, %c0_34] : memref<1x8x32xf32, #tpu.memory_space<vmem>>, vector<1x8x32xf32>
    %47 = vector.shape_cast %46 : vector<1x8x32xf32> to vector<8x32xf32>
    %cst_35 = arith.constant dense<0.000000e+00> : vector<16x32xf32>
    %48 = tpu.matmul %45, %47, %cst_35 {dimension_numbers = #tpu.dot_dimension_numbers<[1], [0], [0], [1], [0, 0, 1, 1], [], []>} : vector<16x8xf32>, vector<8x32xf32>, vector<16x32xf32> -> vector<16x32xf32>
    %c0_i32 = arith.constant 0 : i32
    %49 = arith.cmpi eq, %arg1, %c0_i32 : i32
    %50 = arith.extui %49 : i1 to i32
    %c0_i32_36 = arith.constant 0 : i32
    %51 = arith.cmpi ne, %50, %c0_i32_36 : i32
    scf.if %51 {
      %cst_42 = arith.constant 0.000000e+00 : f32
      %58 = vector.broadcast %cst_42 : f32 to vector<16x32xf32>
      %c0_43 = arith.constant 0 : index
      %c0_44 = arith.constant 0 : index
      %59 = vector.load %arg21[%c0_43, %c0_44] : memref<16x32xf32, #tpu.memory_space<vmem>>, vector<16x32xf32>
      tpu.vector_store %arg21[%c0_43, %c0_44], %58 {strides = array<i32>} : memref<16x32xf32, #tpu.memory_space<vmem>>, vector<16x32xf32>,
    } else {
    }
    %c0_37 = arith.constant 0 : index
    %c0_38 = arith.constant 0 : index
    %52 = vector.load %arg21[%c0_37, %c0_38] : memref<16x32xf32, #tpu.memory_space<vmem>>, vector<16x32xf32>
    %53 = arith.addf %52, %48 : vector<16x32xf32>
    %c0_39 = arith.constant 0 : index
    %c0_40 = arith.constant 0 : index
    %54 = vector.load %arg21[%c0_39, %c0_40] : memref<16x32xf32, #tpu.memory_space<vmem>>, vector<16x32xf32>
    tpu.vector_store %arg21[%c0_39, %c0_40], %53 {strides = array<i32>} : memref<16x32xf32, #tpu.memory_space<vmem>>, vector<16x32xf32>,
    %c3_i32 = arith.constant 3 : i32
    %55 = arith.cmpi eq, %arg1, %c3_i32 : i32
    %56 = arith.extui %55 : i1 to i32
    %c0_i32_41 = arith.constant 0 : i32
    %57 = arith.cmpi ne, %56, %c0_i32_41 : i32
    scf.if %57 {
      %c0_42 = arith.constant 0 : index
      %c0_43 = arith.constant 0 : index
      %58 = vector.load %arg21[%c0_42, %c0_43] : memref<16x32xf32, #tpu.memory_space<vmem>>, vector<16x32xf32>
      %c0_44 = arith.constant 0 : index
      %c0_45 = arith.constant 0 : index
      %59 = vector.load %arg11[%c0_44, %c0_45] : memref<1x32xf32, #tpu.memory_space<vmem>>, vector<1x32xf32>
      %60 = vector.broadcast %59 : vector<1x32xf32> to vector<16x32xf32>
      %61 = arith.addf %58, %60 : vector<16x32xf32>
      %62 = arith.addf %61, %1 : vector<16x32xf32>
      %c0_46 = arith.constant 0 : index
      %c0_47 = arith.constant 0 : index
      %63 = vector.load %arg12[%c0_46, %c0_47] : memref<1x32xf32, #tpu.memory_space<vmem>>, vector<1x32xf32>
      %c0_48 = arith.constant 0 : index
      %c0_49 = arith.constant 0 : index
      %64 = vector.load %arg13[%c0_48, %c0_49] : memref<1x32xf32, #tpu.memory_space<vmem>>, vector<1x32xf32>
      %cst_50 = arith.constant dense<0.000000e+00> : vector<16xf32>
      %65 = vector.multi_reduction <add>, %62, %cst_50 [1] : vector<16x32xf32> to vector<16xf32>
      %66 = vector.shape_cast %65 : vector<16xf32> to vector<16x1xf32>
      %cst_51 = arith.constant 3.200000e+01 : f32
      %67 = vector.broadcast %cst_51 : f32 to vector<16x1xf32>
      %68 = arith.divf %66, %67 : vector<16x1xf32>
      %69 = vector.broadcast %68 : vector<16x1xf32> to vector<16x32xf32>
      %70 = arith.subf %62, %69 : vector<16x32xf32>
      %71 = arith.mulf %70, %70 : vector<16x32xf32>
      %cst_52 = arith.constant dense<0.000000e+00> : vector<16xf32>
      %72 = vector.multi_reduction <add>, %71, %cst_52 [1] : vector<16x32xf32> to vector<16xf32>
      %73 = vector.shape_cast %72 : vector<16xf32> to vector<16x1xf32>
      %cst_53 = arith.constant 3.100000e+01 : f32
      %74 = vector.broadcast %cst_53 : f32 to vector<16x1xf32>
      %75 = arith.divf %73, %74 : vector<16x1xf32>
      %76 = math.sqrt %75 : vector<16x1xf32>
      %77 = vector.broadcast %68 : vector<16x1xf32> to vector<16x32xf32>
      %78 = arith.subf %62, %77 : vector<16x32xf32>
      %79 = vector.broadcast %63 : vector<1x32xf32> to vector<16x32xf32>
      %80 = arith.mulf %79, %78 : vector<16x32xf32>
      %cst_54 = arith.constant 9.99999997E-7 : f32
      %81 = vector.broadcast %cst_54 : f32 to vector<16x1xf32>
      %82 = arith.addf %76, %81 : vector<16x1xf32>
      %83 = vector.broadcast %82 : vector<16x1xf32> to vector<16x32xf32>
      %84 = arith.divf %80, %83 : vector<16x32xf32>
      %85 = vector.broadcast %64 : vector<1x32xf32> to vector<16x32xf32>
      %86 = arith.addf %84, %85 : vector<16x32xf32>
      %c0_55 = arith.constant 0 : index
      %c0_56 = arith.constant 0 : index
      %87 = vector.load %arg14[%c0_55, %c0_56] : memref<32x64xf32, #tpu.memory_space<vmem>>, vector<32x64xf32>
      %cst_57 = arith.constant dense<0.000000e+00> : vector<16x64xf32>
      %88 = tpu.matmul %86, %87, %cst_57 {dimension_numbers = #tpu.dot_dimension_numbers<[1], [0], [0], [1], [0, 0, 1, 1], [], []>} : vector<16x32xf32>, vector<32x64xf32>, vector<16x64xf32> -> vector<16x64xf32>
      %c0_58 = arith.constant 0 : index
      %c0_59 = arith.constant 0 : index
      %89 = vector.load %arg15[%c0_58, %c0_59] : memref<1x64xf32, #tpu.memory_space<vmem>>, vector<1x64xf32>
      %90 = vector.broadcast %89 : vector<1x64xf32> to vector<16x64xf32>
      %91 = arith.addf %88, %90 : vector<16x64xf32>
      %cst_60 = arith.constant 0.000000e+00 : f32
      %92 = vector.broadcast %cst_60 : f32 to vector<16x64xf32>
      %93 = arith.maximumf %91, %92 : vector<16x64xf32>
      %c0_61 = arith.constant 0 : index
      %c0_62 = arith.constant 0 : index
      %94 = vector.load %arg16[%c0_61, %c0_62] : memref<64x32xf32, #tpu.memory_space<vmem>>, vector<64x32xf32>
      %cst_63 = arith.constant dense<0.000000e+00> : vector<16x32xf32>
      %95 = tpu.matmul %93, %94, %cst_63 {dimension_numbers = #tpu.dot_dimension_numbers<[1], [0], [0], [1], [0, 0, 1, 1], [], []>} : vector<16x64xf32>, vector<64x32xf32>, vector<16x32xf32> -> vector<16x32xf32>
      %c0_64 = arith.constant 0 : index
      %c0_65 = arith.constant 0 : index
      %96 = vector.load %arg17[%c0_64, %c0_65] : memref<1x32xf32, #tpu.memory_space<vmem>>, vector<1x32xf32>
      %97 = vector.broadcast %96 : vector<1x32xf32> to vector<16x32xf32>
      %98 = arith.addf %95, %97 : vector<16x32xf32>
      %99 = arith.addf %98, %86 : vector<16x32xf32>
      %c0_66 = arith.constant 0 : index
      %c0_67 = arith.constant 0 : index
      %100 = vector.load %arg18[%c0_66, %c0_67] : memref<1x32xf32, #tpu.memory_space<vmem>>, vector<1x32xf32>
      %c0_68 = arith.constant 0 : index
      %c0_69 = arith.constant 0 : index
      %101 = vector.load %arg19[%c0_68, %c0_69] : memref<1x32xf32, #tpu.memory_space<vmem>>, vector<1x32xf32>
      %cst_70 = arith.constant dense<0.000000e+00> : vector<16xf32>
      %102 = vector.multi_reduction <add>, %99, %cst_70 [1] : vector<16x32xf32> to vector<16xf32>
      %103 = vector.shape_cast %102 : vector<16xf32> to vector<16x1xf32>
      %cst_71 = arith.constant 3.200000e+01 : f32
      %104 = vector.broadcast %cst_71 : f32 to vector<16x1xf32>
      %105 = arith.divf %103, %104 : vector<16x1xf32>
      %106 = vector.broadcast %105 : vector<16x1xf32> to vector<16x32xf32>
      %107 = arith.subf %99, %106 : vector<16x32xf32>
      %108 = arith.mulf %107, %107 : vector<16x32xf32>
      %cst_72 = arith.constant dense<0.000000e+00> : vector<16xf32>
      %109 = vector.multi_reduction <add>, %108, %cst_72 [1] : vector<16x32xf32> to vector<16xf32>
      %110 = vector.shape_cast %109 : vector<16xf32> to vector<16x1xf32>
      %cst_73 = arith.constant 3.100000e+01 : f32
      %111 = vector.broadcast %cst_73 : f32 to vector<16x1xf32>
      %112 = arith.divf %110, %111 : vector<16x1xf32>
      %113 = math.sqrt %112 : vector<16x1xf32>
      %114 = vector.broadcast %105 : vector<16x1xf32> to vector<16x32xf32>
      %115 = arith.subf %99, %114 : vector<16x32xf32>
      %116 = vector.broadcast %100 : vector<1x32xf32> to vector<16x32xf32>
      %117 = arith.mulf %116, %115 : vector<16x32xf32>
      %cst_74 = arith.constant 9.99999997E-7 : f32
      %118 = vector.broadcast %cst_74 : f32 to vector<16x1xf32>
      %119 = arith.addf %113, %118 : vector<16x1xf32>
      %120 = vector.broadcast %119 : vector<16x1xf32> to vector<16x32xf32>
      %121 = arith.divf %117, %120 : vector<16x32xf32>
      %122 = vector.broadcast %101 : vector<1x32xf32> to vector<16x32xf32>
      %123 = arith.addf %121, %122 : vector<16x32xf32>
      %124 = vector.shape_cast %123 : vector<16x32xf32> to vector<2x8x32xf32>
      %c0_75 = arith.constant 0 : index
      %c0_76 = arith.constant 0 : index
      %c0_77 = arith.constant 0 : index
      %125 = vector.load %arg20[%c0_75, %c0_76, %c0_77] : memref<2x8x32xf32, #tpu.memory_space<vmem>>, vector<2x8x32xf32>
      tpu.vector_store %arg20[%c0_75, %c0_76, %c0_77], %124 {strides = array<i32>} : memref<2x8x32xf32, #tpu.memory_space<vmem>>, vector<2x8x32xf32>,
    } else {
    }
    return
  }
  func.func @transform_0(%arg0: i32, %arg1: i32) -> (i32, i32, i32) {
    %c0_i32 = arith.constant 0 : i32
    %c0_i32_0 = arith.constant 0 : i32
    %c0_i32_1 = arith.constant 0 : i32
    return %arg0, %c0_i32, %c0_i32_0 : i32, i32, i32
  }
  func.func @transform_1(%arg0: i32, %arg1: i32) -> (i32, i32, i32) {
    %c0_i32 = arith.constant 0 : i32
    %c0_i32_0 = arith.constant 0 : i32
    %c0_i32_1 = arith.constant 0 : i32
    return %arg0, %c0_i32, %c0_i32_0 : i32, i32, i32
  }
  func.func @transform_2(%arg0: i32, %arg1: i32) -> (i32, i32, i32) {
    %c0_i32 = arith.constant 0 : i32
    %c0_i32_0 = arith.constant 0 : i32
    %c0_i32_1 = arith.constant 0 : i32
    return %arg1, %c0_i32, %c0_i32_0 : i32, i32, i32
  }
  func.func @transform_3(%arg0: i32, %arg1: i32) -> (i32, i32, i32) {
    %c0_i32 = arith.constant 0 : i32
    %c0_i32_0 = arith.constant 0 : i32
    %c0_i32_1 = arith.constant 0 : i32
    return %arg1, %c0_i32, %c0_i32_0 : i32, i32, i32
  }
  func.func @transform_4(%arg0: i32, %arg1: i32) -> (i32, i32, i32) {
    %c0_i32 = arith.constant 0 : i32
    %c0_i32_0 = arith.constant 0 : i32
    %c0_i32_1 = arith.constant 0 : i32
    return %arg1, %c0_i32, %c0_i32_0 : i32, i32, i32
  }
  func.func @transform_5(%arg0: i32, %arg1: i32) -> (i32, i32, i32) {
    %c0_i32 = arith.constant 0 : i32
    %c0_i32_0 = arith.constant 0 : i32
    %c0_i32_1 = arith.constant 0 : i32
    return %arg1, %c0_i32, %c0_i32_0 : i32, i32, i32
  }
  func.func @transform_6(%arg0: i32, %arg1: i32) -> (i32, i32, i32) {
    %c0_i32 = arith.constant 0 : i32
    %c0_i32_0 = arith.constant 0 : i32
    %c0_i32_1 = arith.constant 0 : i32
    return %arg1, %c0_i32, %c0_i32_0 : i32, i32, i32
  }
  func.func @transform_7(%arg0: i32, %arg1: i32) -> (i32, i32, i32) {
    %c0_i32 = arith.constant 0 : i32
    %c0_i32_0 = arith.constant 0 : i32
    %c0_i32_1 = arith.constant 0 : i32
    return %arg1, %c0_i32, %c0_i32_0 : i32, i32, i32
  }
  func.func @transform_8(%arg0: i32, %arg1: i32) -> (i32, i32, i32) {
    %c0_i32 = arith.constant 0 : i32
    %c0_i32_0 = arith.constant 0 : i32
    %c0_i32_1 = arith.constant 0 : i32
    return %arg1, %c0_i32, %c0_i32_0 : i32, i32, i32
  }
  func.func @transform_9(%arg0: i32, %arg1: i32) -> (i32, i32) {
    %c0_i32 = arith.constant 0 : i32
    %c0_i32_0 = arith.constant 0 : i32
    %c0_i32_1 = arith.constant 0 : i32
    return %c0_i32, %c0_i32_0 : i32, i32
  }
  func.func @transform_10(%arg0: i32, %arg1: i32) -> (i32, i32) {
    %c0_i32 = arith.constant 0 : i32
    %c0_i32_0 = arith.constant 0 : i32
    %c0_i32_1 = arith.constant 0 : i32
    return %c0_i32, %c0_i32_0 : i32, i32
  }
  func.func @transform_11(%arg0: i32, %arg1: i32) -> (i32, i32) {
    %c0_i32 = arith.constant 0 : i32
    %c0_i32_0 = arith.constant 0 : i32
    %c0_i32_1 = arith.constant 0 : i32
    return %c0_i32, %c0_i32_0 : i32, i32
  }
  func.func @transform_12(%arg0: i32, %arg1: i32) -> (i32, i32) {
    %c0_i32 = arith.constant 0 : i32
    %c0_i32_0 = arith.constant 0 : i32
    %c0_i32_1 = arith.constant 0 : i32
    return %c0_i32, %c0_i32_0 : i32, i32
  }
  func.func @transform_13(%arg0: i32, %arg1: i32) -> (i32, i32) {
    %c0_i32 = arith.constant 0 : i32
    %c0_i32_0 = arith.constant 0 : i32
    %c0_i32_1 = arith.constant 0 : i32
    return %c0_i32, %c0_i32_0 : i32, i32
  }
  func.func @transform_14(%arg0: i32, %arg1: i32) -> (i32, i32) {
    %c0_i32 = arith.constant 0 : i32
    %c0_i32_0 = arith.constant 0 : i32
    %c0_i32_1 = arith.constant 0 : i32
    return %c0_i32, %c0_i32_0 : i32, i32
  }
  func.func @transform_15(%arg0: i32, %arg1: i32) -> (i32, i32) {
    %c0_i32 = arith.constant 0 : i32
    %c0_i32_0 = arith.constant 0 : i32
    %c0_i32_1 = arith.constant 0 : i32
    return %c0_i32, %c0_i32_0 : i32, i32
  }
  func.func @transform_16(%arg0: i32, %arg1: i32) -> (i32, i32) {
    %c0_i32 = arith.constant 0 : i32
    %c0_i32_0 = arith.constant 0 : i32
    %c0_i32_1 = arith.constant 0 : i32
    return %c0_i32, %c0_i32_0 : i32, i32
  }
  func.func @transform_17(%arg0: i32, %arg1: i32) -> (i32, i32) {
    %c0_i32 = arith.constant 0 : i32
    %c0_i32_0 = arith.constant 0 : i32
    %c0_i32_1 = arith.constant 0 : i32
    return %c0_i32, %c0_i32_0 : i32, i32
  }
  func.func @transform_18(%arg0: i32, %arg1: i32) -> (i32, i32, i32) {
    %c0_i32 = arith.constant 0 : i32
    %c0_i32_0 = arith.constant 0 : i32
    %c0_i32_1 = arith.constant 0 : i32
    return %arg0, %c0_i32, %c0_i32_0 : i32, i32, i32
  }
}

module attributes {stable_mosaic.version = 11 : i64} {
  func.func @encoder_layer_kernel(%arg0: i32, %arg1: i32, %arg2: memref<2x8x32xf32, #tpu.memory_space<vmem>>, %arg3: memref<2x8x8xi8, #tpu.memory_space<vmem>>, %arg4: memref<1x32x8xf32, #tpu.memory_space<vmem>>, %arg5: memref<1x1x8xf32, #tpu.memory_space<vmem>>, %arg6: memref<1x32x8xf32, #tpu.memory_space<vmem>>, %arg7: memref<1x1x8xf32, #tpu.memory_space<vmem>>, %arg8: memref<1x32x8xf32, #tpu.memory_space<vmem>>, %arg9: memref<1x1x8xf32, #tpu.memory_space<vmem>>, %arg10: memref<1x8x32xf32, #tpu.memory_space<vmem>>, %arg11: memref<1x32xf32, #tpu.memory_space<vmem>>, %arg12: memref<1x32xf32, #tpu.memory_space<vmem>>, %arg13: memref<1x32xf32, #tpu.memory_space<vmem>>, %arg14: memref<32x64xf32, #tpu.memory_space<vmem>>, %arg15: memref<1x64xf32, #tpu.memory_space<vmem>>, %arg16: memref<64x32xf32, #tpu.memory_space<vmem>>, %arg17: memref<1x32xf32, #tpu.memory_space<vmem>>, %arg18: memref<1x32xf32, #tpu.memory_space<vmem>>, %arg19: memref<1x32xf32, #tpu.memory_space<vmem>>, %arg20: memref<2x8x32xf32, #tpu.memory_space<vmem>>, %arg21: memref<16x32xf32, #tpu.memory_space<vmem>>) attributes {dimension_semantics = [#tpu.dimension_semantics<parallel>, #tpu.dimension_semantics<arbitrary>], iteration_bounds = array<i64: 1, 4>, scalar_prefetch = 0 : i64, scratch_operands = 1 : i64, tpu.core_type = #tpu.core_type<tc>, window_params = [{transform_indices = @transform_0, window_bounds = array<i64: 2, 8, 32>}, {transform_indices = @transform_1, window_bounds = array<i64: 2, 8, 8>}, {transform_indices = @transform_2, window_bounds = array<i64: 1, 32, 8>}, {transform_indices = @transform_3, window_bounds = array<i64: 1, 1, 8>}, {transform_indices = @transform_4, window_bounds = array<i64: 1, 32, 8>}, {transform_indices = @transform_5, window_bounds = array<i64: 1, 1, 8>}, {transform_indices = @transform_6, window_bounds = array<i64: 1, 32, 8>}, {transform_indices = @transform_7, window_bounds = array<i64: 1, 1, 8>}, {transform_indices = @transform_8, window_bounds = array<i64: 1, 8, 32>}, {pipeline_mode = #tpu.pipeline_mode<synchronous>, transform_indices = @transform_9, window_bounds = array<i64: 1, 32>}, {pipeline_mode = #tpu.pipeline_mode<synchronous>, transform_indices = @transform_10, window_bounds = array<i64: 1, 32>}, {pipeline_mode = #tpu.pipeline_mode<synchronous>, transform_indices = @transform_11, window_bounds = array<i64: 1, 32>}, {pipeline_mode = #tpu.pipeline_mode<synchronous>, transform_indices = @transform_12, window_bounds = array<i64: 32, 64>}, {pipeline_mode = #tpu.pipeline_mode<synchronous>, transform_indices = @transform_13, window_bounds = array<i64: 1, 64>}, {pipeline_mode = #tpu.pipeline_mode<synchronous>, transform_indices = @transform_14, window_bounds = array<i64: 64, 32>}, {pipeline_mode = #tpu.pipeline_mode<synchronous>, transform_indices = @transform_15, window_bounds = array<i64: 1, 32>}, {pipeline_mode = #tpu.pipeline_mode<synchronous>, transform_indices = @transform_16, window_bounds = array<i64: 1, 32>}, {pipeline_mode = #tpu.pipeline_mode<synchronous>, transform_indices = @transform_17, window_bounds = array<i64: 1, 32>}, {transform_indices = @transform_18, window_bounds = array<i64: 2, 8, 32>}]} {
    %c0 = arith.constant 0 : index
    %c0_0 = arith.constant 0 : index
    %c0_1 = arith.constant 0 : index
    %0 = vector.load %arg2[%c0, %c0_0, %c0_1] : memref<2x8x32xf32, #tpu.memory_space<vmem>>, vector<2x8x32xf32>
    %1 = vector.shape_cast %0 : vector<2x8x32xf32> to vector<16x32xf32>
    %c0_2 = arith.constant 0 : index
    %c0_3 = arith.constant 0 : index
    %c0_4 = arith.constant 0 : index
    %2 = vector.load %arg4[%c0_2, %c0_3, %c0_4] : memref<1x32x8xf32, #tpu.memory_space<vmem>>, vector<1x32x8xf32>
    %3 = vector.shape_cast %2 : vector<1x32x8xf32> to vector<32x8xf32>
    %cst = arith.constant dense<0.000000e+00> : vector<16x8xf32>
    %4 = tpu.matmul %1, %3, %cst {dimension_numbers = #tpu.dot_dimension_numbers<[1], [0], [0], [1], [0, 0, 1, 1], [], []>} : vector<16x32xf32>, vector<32x8xf32>, vector<16x8xf32> -> vector<16x8xf32>
    %c0_5 = arith.constant 0 : index
    %c0_6 = arith.constant 0 : index
    %c0_7 = arith.constant 0 : index
    %5 = vector.load %arg5[%c0_5, %c0_6, %c0_7] : memref<1x1x8xf32, #tpu.memory_space<vmem>>, vector<1x1x8xf32>
    %6 = vector.shape_cast %5 : vector<1x1x8xf32> to vector<1x8xf32>
    %7 = vector.broadcast %6 : vector<1x8xf32> to vector<16x8xf32>
    %8 = arith.addf %4, %7 : vector<16x8xf32>
    %c0_8 = arith.constant 0 : index
    %c0_9 = arith.constant 0 : index
    %c0_10 = arith.constant 0 : index
    %9 = vector.load %arg6[%c0_8, %c0_9, %c0_10] : memref<1x32x8xf32, #tpu.memory_space<vmem>>, vector<1x32x8xf32>
    %10 = vector.shape_cast %9 : vector<1x32x8xf32> to vector<32x8xf32>
    %cst_11 = arith.constant dense<0.000000e+00> : vector<16x8xf32>
    %11 = tpu.matmul %1, %10, %cst_11 {dimension_numbers = #tpu.dot_dimension_numbers<[1], [0], [0], [1], [0, 0, 1, 1], [], []>} : vector<16x32xf32>, vector<32x8xf32>, vector<16x8xf32> -> vector<16x8xf32>
    %c0_12 = arith.constant 0 : index
    %c0_13 = arith.constant 0 : index
    %c0_14 = arith.constant 0 : index
    %12 = vector.load %arg7[%c0_12, %c0_13, %c0_14] : memref<1x1x8xf32, #tpu.memory_space<vmem>>, vector<1x1x8xf32>
    %13 = vector.shape_cast %12 : vector<1x1x8xf32> to vector<1x8xf32>
    %14 = vector.broadcast %13 : vector<1x8xf32> to vector<16x8xf32>
    %15 = arith.addf %11, %14 : vector<16x8xf32>
    %c0_15 = arith.constant 0 : index
    %c0_16 = arith.constant 0 : index
    %c0_17 = arith.constant 0 : index
    %16 = vector.load %arg8[%c0_15, %c0_16, %c0_17] : memref<1x32x8xf32, #tpu.memory_space<vmem>>, vector<1x32x8xf32>
    %17 = vector.shape_cast %16 : vector<1x32x8xf32> to vector<32x8xf32>
    %cst_18 = arith.constant dense<0.000000e+00> : vector<16x8xf32>
    %18 = tpu.matmul %1, %17, %cst_18 {dimension_numbers = #tpu.dot_dimension_numbers<[1], [0], [0], [1], [0, 0, 1, 1], [], []>} : vector<16x32xf32>, vector<32x8xf32>, vector<16x8xf32> -> vector<16x8xf32>
    %c0_19 = arith.constant 0 : index
    %c0_20 = arith.constant 0 : index
    %c0_21 = arith.constant 0 : index
    %19 = vector.load %arg9[%c0_19, %c0_20, %c0_21] : memref<1x1x8xf32, #tpu.memory_space<vmem>>, vector<1x1x8xf32>
    %20 = vector.shape_cast %19 : vector<1x1x8xf32> to vector<1x8xf32>
    %21 = vector.broadcast %20 : vector<1x8xf32> to vector<16x8xf32>
    %22 = arith.addf %18, %21 : vector<16x8xf32>
    %23 = vector.shape_cast %8 : vector<16x8xf32> to vector<2x8x8xf32>
    %24 = vector.shape_cast %15 : vector<16x8xf32> to vector<2x8x8xf32>
    %25 = vector.shape_cast %22 : vector<16x8xf32> to vector<2x8x8xf32>
    "tpu.trace_start"() <{level = 10 : i32, message = "bqd,bkd->bqk"}> : () -> ()
    %cst_22 = arith.constant dense<0.000000e+00> : vector<2x8x8xf32>
    %26 = tpu.matmul %23, %24, %cst_22 {dimension_numbers = #tpu.dot_dimension_numbers<[2], [2], [1], [1], [0, 0, 0, 1, 1, 1], [0], [0]>} : vector<2x8x8xf32>, vector<2x8x8xf32>, vector<2x8x8xf32> -> vector<2x8x8xf32>
    "tpu.trace_stop"() : () -> ()
    %cst_23 = arith.constant 0.353553385 : f32
    %27 = vector.broadcast %cst_23 : f32 to vector<2x8x8xf32>
    %28 = arith.mulf %26, %27 : vector<2x8x8xf32>
    %c0_24 = arith.constant 0 : index
    %c0_25 = arith.constant 0 : index
    %c0_26 = arith.constant 0 : index
    %29 = vector.load %arg3[%c0_24, %c0_25, %c0_26] : memref<2x8x8xi8, #tpu.memory_space<vmem>>, vector<2x8x8xi8>
    %30 = arith.sitofp %29 : vector<2x8x8xi8> to vector<2x8x8xf32>
    %cst_27 = arith.constant 5.000000e-01 : f32
    %31 = vector.broadcast %cst_27 : f32 to vector<2x8x8xf32>
    %32 = arith.cmpf ogt, %30, %31 : vector<2x8x8xf32>
    %cst_28 = arith.constant -9.99999984E+17 : f32
    %33 = vector.broadcast %cst_28 : f32 to vector<2x8x8xf32>
    %34 = arith.select %32, %33, %28 : vector<2x8x8xi1>, vector<2x8x8xf32>
    %cst_29 = arith.constant dense<0xFF800000> : vector<2x8xf32>
    %35 = vector.multi_reduction <maximumf>, %34, %cst_29 [2] : vector<2x8x8xf32> to vector<2x8xf32>
    %36 = vector.shape_cast %35 : vector<2x8xf32> to vector<2x8x1xf32>
    %37 = vector.broadcast %36 : vector<2x8x1xf32> to vector<2x8x8xf32>
    %38 = arith.subf %34, %37 : vector<2x8x8xf32>
    %39 = math.exp %38 : vector<2x8x8xf32>
    %cst_30 = arith.constant dense<0.000000e+00> : vector<2x8xf32>
    %40 = vector.multi_reduction <add>, %39, %cst_30 [2] : vector<2x8x8xf32> to vector<2x8xf32>
    %41 = vector.shape_cast %40 : vector<2x8xf32> to vector<2x8x1xf32>
    %42 = vector.broadcast %41 : vector<2x8x1xf32> to vector<2x8x8xf32>
    %43 = arith.divf %39, %42 : vector<2x8x8xf32>
    "tpu.trace_start"() <{level = 10 : i32, message = "bqk,bkd->bqd"}> : () -> ()
    %cst_31 = arith.constant dense<0.000000e+00> : vector<2x8x8xf32>
    %44 = tpu.matmul %43, %25, %cst_31 {dimension_numbers = #tpu.dot_dimension_numbers<[2], [1], [1], [2], [0, 0, 0, 1, 1, 2], [0], [0]>} : vector<2x8x8xf32>, vector<2x8x8xf32>, vector<2x8x8xf32> -> vector<2x8x8xf32>
    "tpu.trace_stop"() : () -> ()
    %45 = vector.shape_cast %44 : vector<2x8x8xf32> to vector<16x8xf32>
    %c0_32 = arith.constant 0 : index
    %c0_33 = arith.constant 0 : index
    %c0_34 = arith.constant 0 : index
    %46 = vector.load %arg10[%c0_32, %c0_33, %c0_34] : memref<1x8x32xf32, #tpu.memory_space<vmem>>, vector<1x8x32xf32>
    %47 = vector.shape_cast %46 : vector<1x8x32xf32> to vector<8x32xf32>
    %cst_35 = arith.constant dense<0.000000e+00> : vector<16x32xf32>
    %48 = tpu.matmul %45, %47, %cst_35 {dimension_numbers = #tpu.dot_dimension_numbers<[1], [0], [0], [1], [0, 0, 1, 1], [], []>} : vector<16x8xf32>, vector<8x32xf32>, vector<16x32xf32> -> vector<16x32xf32>
    %c0_i32 = arith.constant 0 : i32
    %49 = arith.cmpi eq, %arg1, %c0_i32 : i32
    %50 = arith.extui %49 : i1 to i32
    %c0_i32_36 = arith.constant 0 : i32
    %51 = arith.cmpi ne, %50, %c0_i32_36 : i32
    scf.if %51 {
      %cst_42 = arith.constant 0.000000e+00 : f32
      %58 = vector.broadcast %cst_42 : f32 to vector<16x32xf32>
      %c0_43 = arith.constant 0 : index
      %c0_44 = arith.constant 0 : index
      %59 = vector.load %arg21[%c0_43, %c0_44] : memref<16x32xf32, #tpu.memory_space<vmem>>, vector<16x32xf32>
      tpu.vector_store %arg21[%c0_43, %c0_44], %58 {strides = array<i32>} : memref<16x32xf32, #tpu.memory_space<vmem>>, vector<16x32xf32>,
    } else {
    }
    %c0_37 = arith.constant 0 : index
    %c0_38 = arith.constant 0 : index
    %52 = vector.load %arg21[%c0_37, %c0_38] : memref<16x32xf32, #tpu.memory_space<vmem>>, vector<16x32xf32>
    %53 = arith.addf %52, %48 : vector<16x32xf32>
    %c0_39 = arith.constant 0 : index
    %c0_40 = arith.constant 0 : index
    %54 = vector.load %arg21[%c0_39, %c0_40] : memref<16x32xf32, #tpu.memory_space<vmem>>, vector<16x32xf32>
    tpu.vector_store %arg21[%c0_39, %c0_40], %53 {strides = array<i32>} : memref<16x32xf32, #tpu.memory_space<vmem>>, vector<16x32xf32>,
    %c3_i32 = arith.constant 3 : i32
    %55 = arith.cmpi eq, %arg1, %c3_i32 : i32
    %56 = arith.extui %55 : i1 to i32
    %c0_i32_41 = arith.constant 0 : i32
    %57 = arith.cmpi ne, %56, %c0_i32_41 : i32
    scf.if %57 {
      %c0_42 = arith.constant 0 : index
      %c0_43 = arith.constant 0 : index
      %58 = vector.load %arg21[%c0_42, %c0_43] : memref<16x32xf32, #tpu.memory_space<vmem>>, vector<16x32xf32>
      %c0_44 = arith.constant 0 : index
      %c0_45 = arith.constant 0 : index
      %59 = vector.load %arg11[%c0_44, %c0_45] : memref<1x32xf32, #tpu.memory_space<vmem>>, vector<1x32xf32>
      %60 = vector.broadcast %59 : vector<1x32xf32> to vector<16x32xf32>
      %61 = arith.addf %58, %60 : vector<16x32xf32>
      %62 = arith.addf %61, %1 : vector<16x32xf32>
      %c0_46 = arith.constant 0 : index
      %c0_47 = arith.constant 0 : index
      %63 = vector.load %arg12[%c0_46, %c0_47] : memref<1x32xf32, #tpu.memory_space<vmem>>, vector<1x32xf32>
      %c0_48 = arith.constant 0 : index
      %c0_49 = arith.constant 0 : index
      %64 = vector.load %arg13[%c0_48, %c0_49] : memref<1x32xf32, #tpu.memory_space<vmem>>, vector<1x32xf32>
      %cst_50 = arith.constant dense<0.000000e+00> : vector<16xf32>
      %65 = vector.multi_reduction <add>, %62, %cst_50 [1] : vector<16x32xf32> to vector<16xf32>
      %66 = vector.shape_cast %65 : vector<16xf32> to vector<16x1xf32>
      %cst_51 = arith.constant 3.200000e+01 : f32
      %67 = vector.broadcast %cst_51 : f32 to vector<16x1xf32>
      %68 = arith.divf %66, %67 : vector<16x1xf32>
      %69 = vector.broadcast %68 : vector<16x1xf32> to vector<16x32xf32>
      %70 = arith.subf %62, %69 : vector<16x32xf32>
      %71 = arith.mulf %70, %70 : vector<16x32xf32>
      %cst_52 = arith.constant dense<0.000000e+00> : vector<16xf32>
      %72 = vector.multi_reduction <add>, %71, %cst_52 [1] : vector<16x32xf32> to vector<16xf32>
      %73 = vector.shape_cast %72 : vector<16xf32> to vector<16x1xf32>
      %cst_53 = arith.constant 3.100000e+01 : f32
      %74 = vector.broadcast %cst_53 : f32 to vector<16x1xf32>
      %75 = arith.divf %73, %74 : vector<16x1xf32>
      %76 = math.sqrt %75 : vector<16x1xf32>
      %77 = vector.broadcast %68 : vector<16x1xf32> to vector<16x32xf32>
      %78 = arith.subf %62, %77 : vector<16x32xf32>
      %79 = vector.broadcast %63 : vector<1x32xf32> to vector<16x32xf32>
      %80 = arith.mulf %79, %78 : vector<16x32xf32>
      %cst_54 = arith.constant 9.99999997E-7 : f32
      %81 = vector.broadcast %cst_54 : f32 to vector<16x1xf32>
      %82 = arith.addf %76, %81 : vector<16x1xf32>
      %83 = vector.broadcast %82 : vector<16x1xf32> to vector<16x32xf32>
      %84 = arith.divf %80, %83 : vector<16x32xf32>
      %85 = vector.broadcast %64 : vector<1x32xf32> to vector<16x32xf32>
      %86 = arith.addf %84, %85 : vector<16x32xf32>
      %c0_55 = arith.constant 0 : index
      %c0_56 = arith.constant 0 : index
      %87 = vector.load %arg14[%c0_55, %c0_56] : memref<32x64xf32, #tpu.memory_space<vmem>>, vector<32x64xf32>
      %cst_57 = arith.constant dense<0.000000e+00> : vector<16x64xf32>
      %88 = tpu.matmul %86, %87, %cst_57 {dimension_numbers = #tpu.dot_dimension_numbers<[1], [0], [0], [1], [0, 0, 1, 1], [], []>} : vector<16x32xf32>, vector<32x64xf32>, vector<16x64xf32> -> vector<16x64xf32>
      %c0_58 = arith.constant 0 : index
      %c0_59 = arith.constant 0 : index
      %89 = vector.load %arg15[%c0_58, %c0_59] : memref<1x64xf32, #tpu.memory_space<vmem>>, vector<1x64xf32>
      %90 = vector.broadcast %89 : vector<1x64xf32> to vector<16x64xf32>
      %91 = arith.addf %88, %90 : vector<16x64xf32>
      %cst_60 = arith.constant 0.000000e+00 : f32
      %92 = vector.broadcast %cst_60 : f32 to vector<16x64xf32>
      %93 = arith.maximumf %91, %92 : vector<16x64xf32>
      %c0_61 = arith.constant 0 : index
      %c0_62 = arith.constant 0 : index
      %94 = vector.load %arg16[%c0_61, %c0_62] : memref<64x32xf32, #tpu.memory_space<vmem>>, vector<64x32xf32>
      %cst_63 = arith.constant dense<0.000000e+00> : vector<16x32xf32>
      %95 = tpu.matmul %93, %94, %cst_63 {dimension_numbers = #tpu.dot_dimension_numbers<[1], [0], [0], [1], [0, 0, 1, 1], [], []>} : vector<16x64xf32>, vector<64x32xf32>, vector<16x32xf32> -> vector<16x32xf32>
      %c0_64 = arith.constant 0 : index
      %c0_65 = arith.constant 0 : index
      %96 = vector.load %arg17[%c0_64, %c0_65] : memref<1x32xf32, #tpu.memory_space<vmem>>, vector<1x32xf32>
      %97 = vector.broadcast %96 : vector<1x32xf32> to vector<16x32xf32>
      %98 = arith.addf %95, %97 : vector<16x32xf32>
      %99 = arith.addf %98, %86 : vector<16x32xf32>
      %c0_66 = arith.constant 0 : index
      %c0_67 = arith.constant 0 : index
      %100 = vector.load %arg18[%c0_66, %c0_67] : memref<1x32xf32, #tpu.memory_space<vmem>>, vector<1x32xf32>
      %c0_68 = arith.constant 0 : index
      %c0_69 = arith.constant 0 : index
      %101 = vector.load %arg19[%c0_68, %c0_69] : memref<1x32xf32, #tpu.memory_space<vmem>>, vector<1x32xf32>
      %cst_70 = arith.constant dense<0.000000e+00> : vector<16xf32>
      %102 = vector.multi_reduction <add>, %99, %cst_70 [1] : vector<16x32xf32> to vector<16xf32>
      %103 = vector.shape_cast %102 : vector<16xf32> to vector<16x1xf32>
      %cst_71 = arith.constant 3.200000e+01 : f32
      %104 = vector.broadcast %cst_71 : f32 to vector<16x1xf32>
      %105 = arith.divf %103, %104 : vector<16x1xf32>
      %106 = vector.broadcast %105 : vector<16x1xf32> to vector<16x32xf32>
      %107 = arith.subf %99, %106 : vector<16x32xf32>
      %108 = arith.mulf %107, %107 : vector<16x32xf32>
      %cst_72 = arith.constant dense<0.000000e+00> : vector<16xf32>
      %109 = vector.multi_reduction <add>, %108, %cst_72 [1] : vector<16x32xf32> to vector<16xf32>
      %110 = vector.shape_cast %109 : vector<16xf32> to vector<16x1xf32>
      %cst_73 = arith.constant 3.100000e+01 : f32
      %111 = vector.broadcast %cst_73 : f32 to vector<16x1xf32>
      %112 = arith.divf %110, %111 : vector<16x1xf32>
      %113 = math.sqrt %112 : vector<16x1xf32>
      %114 = vector.broadcast %105 : vector<16x1xf32> to vector<16x32xf32>
      %115 = arith.subf %99, %114 : vector<16x32xf32>
      %116 = vector.broadcast %100 : vector<1x32xf32> to vector<16x32xf32>
      %117 = arith.mulf %116, %115 : vector<16x32xf32>
      %cst_74 = arith.constant 9.99999997E-7 : f32
      %118 = vector.broadcast %cst_74 : f32 to vector<16x1xf32>
      %119 = arith.addf %113, %118 : vector<16x1xf32>
      %120 = vector.broadcast %119 : vector<16x1xf32> to vector<16x32xf32>
      %121 = arith.divf %117, %120 : vector<16x32xf32>
      %122 = vector.broadcast %101 : vector<1x32xf32> to vector<16x32xf32>
      %123 = arith.addf %121, %122 : vector<16x32xf32>
      %124 = vector.shape_cast %123 : vector<16x32xf32> to vector<2x8x32xf32>
      %c0_75 = arith.constant 0 : index
      %c0_76 = arith.constant 0 : index
      %c0_77 = arith.constant 0 : index
      %125 = vector.load %arg20[%c0_75, %c0_76, %c0_77] : memref<2x8x32xf32, #tpu.memory_space<vmem>>, vector<2x8x32xf32>
      tpu.vector_store %arg20[%c0_75, %c0_76, %c0_77], %124 {strides = array<i32>} : memref<2x8x32xf32, #tpu.memory_space<vmem>>, vector<2x8x32xf32>,
    } else {
    }
    return
  }
  func.func @transform_0(%arg0: i32, %arg1: i32) -> (i32, i32, i32) {
    %c0_i32 = arith.constant 0 : i32
    %c0_i32_0 = arith.constant 0 : i32
    %c0_i32_1 = arith.constant 0 : i32
    return %arg0, %c0_i32, %c0_i32_0 : i32, i32, i32
  }
  func.func @transform_1(%arg0: i32, %arg1: i32) -> (i32, i32, i32) {
    %c0_i32 = arith.constant 0 : i32
    %c0_i32_0 = arith.constant 0 : i32
    %c0_i32_1 = arith.constant 0 : i32
    return %arg0, %c0_i32, %c0_i32_0 : i32, i32, i32
  }
  func.func @transform_2(%arg0: i32, %arg1: i32) -> (i32, i32, i32) {
    %c0_i32 = arith.constant 0 : i32
    %c0_i32_0 = arith.constant 0 : i32
    %c0_i32_1 = arith.constant 0 : i32
    return %arg1, %c0_i32, %c0_i32_0 : i32, i32, i32
  }
  func.func @transform_3(%arg0: i32, %arg1: i32) -> (i32, i32, i32) {
    %c0_i32 = arith.constant 0 : i32
    %c0_i32_0 = arith.constant 0 : i32
    %c0_i32_1 = arith.constant 0 : i32
    return %arg1, %c0_i32, %c0_i32_0 : i32, i32, i32
  }
  func.func @transform_4(%arg0: i32, %arg1: i32) -> (i32, i32, i32) {
    %c0_i32 = arith.constant 0 : i32
    %c0_i32_0 = arith.constant 0 : i32
    %c0_i32_1 = arith.constant 0 : i32
    return %arg1, %c0_i32, %c0_i32_0 : i32, i32, i32
  }
  func.func @transform_5(%arg0: i32, %arg1: i32) -> (i32, i32, i32) {
    %c0_i32 = arith.constant 0 : i32
    %c0_i32_0 = arith.constant 0 : i32
    %c0_i32_1 = arith.constant 0 : i32
    return %arg1, %c0_i32, %c0_i32_0 : i32, i32, i32
  }
  func.func @transform_6(%arg0: i32, %arg1: i32) -> (i32, i32, i32) {
    %c0_i32 = arith.constant 0 : i32
    %c0_i32_0 = arith.constant 0 : i32
    %c0_i32_1 = arith.constant 0 : i32
    return %arg1, %c0_i32, %c0_i32_0 : i32, i32, i32
  }
  func.func @transform_7(%arg0: i32, %arg1: i32) -> (i32, i32, i32) {
    %c0_i32 = arith.constant 0 : i32
    %c0_i32_0 = arith.constant 0 : i32
    %c0_i32_1 = arith.constant 0 : i32
    return %arg1, %c0_i32, %c0_i32_0 : i32, i32, i32
  }
  func.func @transform_8(%arg0: i32, %arg1: i32) -> (i32, i32, i32) {
    %c0_i32 = arith.constant 0 : i32
    %c0_i32_0 = arith.constant 0 : i32
    %c0_i32_1 = arith.constant 0 : i32
    return %arg1, %c0_i32, %c0_i32_0 : i32, i32, i32
  }
  func.func @transform_9(%arg0: i32, %arg1: i32) -> (i32, i32) {
    %c0_i32 = arith.constant 0 : i32
    %c0_i32_0 = arith.constant 0 : i32
    %c0_i32_1 = arith.constant 0 : i32
    return %c0_i32, %c0_i32_0 : i32, i32
  }
  func.func @transform_10(%arg0: i32, %arg1: i32) -> (i32, i32) {
    %c0_i32 = arith.constant 0 : i32
    %c0_i32_0 = arith.constant 0 : i32
    %c0_i32_1 = arith.constant 0 : i32
    return %c0_i32, %c0_i32_0 : i32, i32
  }
  func.func @transform_11(%arg0: i32, %arg1: i32) -> (i32, i32) {
    %c0_i32 = arith.constant 0 : i32
    %c0_i32_0 = arith.constant 0 : i32
    %c0_i32_1 = arith.constant 0 : i32
    return %c0_i32, %c0_i32_0 : i32, i32
  }
  func.func @transform_12(%arg0: i32, %arg1: i32) -> (i32, i32) {
    %c0_i32 = arith.constant 0 : i32
    %c0_i32_0 = arith.constant 0 : i32
    %c0_i32_1 = arith.constant 0 : i32
    return %c0_i32, %c0_i32_0 : i32, i32
  }
  func.func @transform_13(%arg0: i32, %arg1: i32) -> (i32, i32) {
    %c0_i32 = arith.constant 0 : i32
    %c0_i32_0 = arith.constant 0 : i32
    %c0_i32_1 = arith.constant 0 : i32
    return %c0_i32, %c0_i32_0 : i32, i32
  }
  func.func @transform_14(%arg0: i32, %arg1: i32) -> (i32, i32) {
    %c0_i32 = arith.constant 0 : i32
    %c0_i32_0 = arith.constant 0 : i32
    %c0_i32_1 = arith.constant 0 : i32
    return %c0_i32, %c0_i32_0 : i32, i32
  }
  func.func @transform_15(%arg0: i32, %arg1: i32) -> (i32, i32) {
    %c0_i32 = arith.constant 0 : i32
    %c0_i32_0 = arith.constant 0 : i32
    %c0_i32_1 = arith.constant 0 : i32
    return %c0_i32, %c0_i32_0 : i32, i32
  }
  func.func @transform_16(%arg0: i32, %arg1: i32) -> (i32, i32) {
    %c0_i32 = arith.constant 0 : i32
    %c0_i32_0 = arith.constant 0 : i32
    %c0_i32_1 = arith.constant 0 : i32
    return %c0_i32, %c0_i32_0 : i32, i32
  }
  func.func @transform_17(%arg0: i32, %arg1: i32) -> (i32, i32) {
    %c0_i32 = arith.constant 0 : i32
    %c0_i32_0 = arith.constant 0 : i32
    %c0_i32_1 = arith.constant 0 : i32
    return %c0_i32, %c0_i32_0 : i32, i32
  }
  func.func @transform_18(%arg0: i32, %arg1: i32) -> (i32, i32, i32) {
    %c0_i32 = arith.constant 0 : i32
    %c0_i32_0 = arith.constant 0 : i32
    %c0_i32_1 = arith.constant 0 : i32
    return %arg0, %c0_i32, %c0_i32_0 : i32, i32, i32
  }
}

</mosaic_0001>

<bundles_post_ra>
// kernel: tpu_custom_call.1
= control target key start
LH: loop header
LB: loop body
LE: loop exit
PB: predicated region body
PF: predicated region fallthrough
CT: control target
= control target key end

     0   :  { %s2563_s0 = inlined_call_operand.vmem [shape: f32[2,8,32], index: 0, kind: input, shape index: {}]   ;;  %s2564_s1 = inlined_call_operand.vmem [shape: s8[2,8,8], index: 1, kind: input, shape index: {}]   ;;  %s2565_s2 = inlined_call_operand.vmem [shape: f32[4,32,8], index: 2, kind: input, shape index: {}]   ;;  %s2566_s3 = inlined_call_operand.vmem [shape: f32[4,1,8], index: 3, kind: input, shape index: {}]   ;;  %s2567_s4 = inlined_call_operand.vmem [shape: f32[4,32,8], index: 4, kind: input, shape index: {}]   ;;  %s2568_s5 = inlined_call_operand.vmem [shape: f32[4,1,8], index: 5, kind: input, shape index: {}]   ;;  %s2569_s6 = inlined_call_operand.vmem [shape: f32[4,32,8], index: 6, kind: input, shape index: {}]   ;;  %s2570_s7 = inlined_call_operand.vmem [shape: f32[4,1,8], index: 7, kind: input, shape index: {}]   ;;  %s2571_s8 = inlined_call_operand.vmem [shape: f32[4,8,32], index: 8, kind: input, shape index: {}]   ;;  %s2572_s9 = inlined_call_operand.vmem [shape: f32[1,32], index: 9, kind: input, shape index: {}]   ;;  %s2573_s10 = inlined_call_operand.vmem [shape: f32[1,32], index: 10, kind: input, shape index: {}]   ;;  %s2574_s11 = inlined_call_operand.vmem [shape: f32[1,32], index: 11, kind: input, shape index: {}]   ;;  %s2575_s12 = inlined_call_operand.vmem [shape: f32[32,64], index: 12, kind: input, shape index: {}]   ;;  %s2576_s13 = inlined_call_operand.vmem [shape: f32[1,64], index: 13, kind: input, shape index: {}]   ;;  %s2577_s14 = inlined_call_operand.vmem [shape: f32[64,32], index: 14, kind: input, shape index: {}]   ;;  %s2578_s15 = inlined_call_operand.vmem [shape: f32[1,32], index: 15, kind: input, shape index: {}]   ;;  %s2579_s16 = inlined_call_operand.vmem [shape: f32[1,32], index: 16, kind: input, shape index: {}]   ;;  %s2580_s17 = inlined_call_operand.vmem [shape: f32[1,32], index: 17, kind: input, shape index: {}]   ;;  %s2581_s18 = inlined_call_operand.hbm [shape: f32[2,8,32], index: 18, kind: output, shape index: {}]  }
   0x1   :  { %2583 = sst [smem:[#allocation6_spill]] %s2563_s0 }
   0x2   :  { %2584 = sst [smem:[#allocation7_spill]] %s2564_s1 }
   0x3   :  { %2585 = sst [smem:[#allocation8_spill]] %s2565_s2 }
   0x4   :  { %23 = vsyncpa [#allocation4], 0  ;;  %s2352_s27 = smov 0   ;;  %s2354_s28 = smov 0  }
   0x5   :  { %s2356_s29 = smov 0  }
   0x6 LB: > { %s1902_s30 = sadd.s32 4294967295, %s2249_s29   ;;  %s38_s0 = sadd.s32 1, %s2245_s28  ;;  %s2249_s29 = sphi %s2356_s29, %s29_s29   ;;  %s2245_s28 = sphi %s2354_s28, %s2591_s28   ;;  %s2241_s27 = sphi %s2352_s27, %s2590_s27  }
   0x7   : > { %p39_p0 = scmp.ge.s32.totalorder %s38_s0, 4  ;;  %p1907_p1 = scmp.ge.s32.totalorder %s2249_s29, 1 }
   0x8   : > { %p600_p2 = scmp.lt.s32.totalorder %s2249_s29, 5 }
   0x9   : > { %s2593_s0 = smov (%p39_p0, %s38_s0), 0 }
   0xa   : > { %p601_p3 = pnand %p1907_p1, %p600_p2 }
   0xb   : > { %p694_p4 = scmp.lt.s32.totalorder (!%p601_p3), %s2241_s27, 3  ;;  %s2586_s20 = sld [smem:[#allocation6_spill]] (!%p601_p3)  ;;  %vm736_vm0 = vcmask (!%p601_p3), 261120   ;;  %v2251_v14 = vmov (!%p601_p3), 0.0   ;;  %vm2252_vm1 = vmmov (!%p601_p3), 0   ;;  %vm990_vm2 = vcmask (!%p601_p3), 64512  }
   0xc   : > { %604 = sbr.rel (%p601_p3) target bundleno = 2343 (0x927), region = 92  ;;  %s2587_s19 = sld [smem:[#allocation8_spill]] (!%p601_p3) }
   0xd   : > { %p1932_p5 = scmp.ne.s32.totalorder (!%p601_p3), %s2241_s27, 0 }
  0x11   : > { %v2377_v0 = vld [vmem:[%s2586_s20] sm:$0xff] (!%p601_p3)  ;;  %v2400_v13 = vld [vmem:[%s2586_s20 + $0x8] sm:$0xff] (!%p601_p3) }
  0x12   : > { %2020 = vmatprep.mubr.msk.f32.mxu1 (!%p601_p3), %vm736_vm0, %v2377_v0  ;;  %2009 = vmatprep.mubr.msk.f32.mxu0 (!%p601_p3), %vm736_vm0, %v2377_v0 }
  0x13   : > { %s2384_s21 = scalar_select %p694_p4, %s2241_s27, 3 }
  0x15   : > { %s2387_s22 = sshll.u32 %s2384_s21, 5  ;;  %s709_s26 = scalar_lea.vmem %s2568_s5, %s2384_s21 }
  0x16   : > { %s706_s24 = scalar_lea.vmem %s2567_s4, %s2387_s22  ;;  %s698_s1 = scalar_lea.vmem %s2587_s19, %s2387_s22  ;;  %v1918_v15 = vld [vmem:[%s709_s26] ss:$0 sm:$0xff] }
  0x17   : > { %v818_v1 = vld [vmem:[%s706_s24] sm:$0xff]  ;;  %v819_v2 = vld [vmem:[%s706_s24 + $0x8] sm:$0xff]  ;;  %v820_v6 = vld [vmem:[%s706_s24 + $0x10] sm:$0xff]  ;;  %s701_s2 = scalar_lea.vmem %s2566_s3, %s2384_s21  ;;  %s714_s25 = scalar_lea.vmem %s2569_s6, %s2387_s22 }
  0x18   : > { %v725_v3 = vld [vmem:[%s698_s1] sm:$0xff]  ;;  %v2097_v4 = vpack.c.bf16 %v819_v2, %v818_v1  ;;  %v726_v5 = vld [vmem:[%s698_s1 + $0x8] sm:$0xff]  ;;  %v821_v7 = vld [vmem:[%s706_s24 + $0x18] sm:$0xff]  ;;  %s717_s23 = scalar_lea.vmem %s2570_s7, %s2384_s21  ;;  %s1914_s24 = sshll.u32 %s2384_s21, 3 }
  0x19   : > { %v2089_v8 = vpack.c.bf16 %v726_v5, %v725_v3  ;;  %v2101_v9 = vpack.c.bf16 %v821_v7, %v820_v6  ;;  %v727_v10 = vld [vmem:[%s698_s1 + $0x10] sm:$0xff]  ;;  %v728_v11 = vld [vmem:[%s698_s1 + $0x18] sm:$0xff]  ;;  %v1915_v17 = vld [vmem:[%s701_s2] ss:$0 sm:$0xff]  ;;  %s2588_s1 = sld [smem:[#allocation7_spill]]  ;;  %s721_s19 = scalar_lea.vmem %s2571_s8, %s1914_s24 }
  0x1a   : > { %2098 = vmatprep.subr.bf16.mxu1 %v2097_v4  ;;  %v2093_v12 = vpack.c.bf16 %v728_v11, %v727_v10  ;;  %v904_v25 = vld [vmem:[%s714_s25] sm:$0xff]  ;;  %v905_v26 = vld [vmem:[%s714_s25 + $0x8] sm:$0xff]  ;;  %v906_v27 = vld [vmem:[%s714_s25 + $0x10] sm:$0xff]  ;;  %v2253_v11 = vmov (!%p1932_p5), 0.0  }
  0x1b   : > { %2100 = vmatpush3.bf16.msra.mxu1 %v2097_v4  ;;  %2090 = vmatprep.subr.bf16.mxu0 %v2089_v8  ;;  %v2105_v28 = vpack.c.bf16 %v905_v26, %v904_v25  ;;  %v907_v29 = vld [vmem:[%s714_s25 + $0x18] sm:$0xff]  ;;  %v1921_v57 = vld [vmem:[%s717_s23] ss:$0 sm:$0xff]  ;;  %1409 = vst.msk [vmem:[#allocation2] sm:$0xff] (!%p1932_p5), %vm736_vm0, %v2253_v11  ;;  %1410 = vst.msk [vmem:[#allocation2 + $0x8] sm:$0xff] (!%p1932_p5), %vm736_vm0, %v2253_v11 }
  0x1c   : > { %2092 = vmatpush3.bf16.msra.mxu0 %v2089_v8  ;;  %2102 = vmatprep.subr.bf16.mxu1 %v2101_v9  ;;  %v2109_v30 = vpack.c.bf16 %v907_v29, %v906_v27  ;;  %v1323_v4 = vld [vmem:[%s721_s19] sm:$0xff] }
  0x1d   : > { %2094 = vmatprep.subr.bf16.mxu0 %v2093_v12 }
  0x1f   : > { %2104 = vmatpush3.bf16.msra.mxu1 %v2101_v9  ;;  %v1953_v31 = vld [vmem:[%s2588_s1] sm:$0xf]  }
  0x20   : > { %2096 = vmatpush3.bf16.msra.mxu0 %v2093_v12  ;;  %2034 = vmatprep.subr.mxu1 %v2251_v14  ;;  %v1954_v32 = vunpack.c.0.s8 %v1953_v31  ;;  %v1955_v34 = vunpack.c.1.s8 %v1953_v31 }
  0x21   : > { %2106 = vmatprep.subr.bf16.mxu0 %v2105_v28 }
  0x22   : > { %2021 = vmatmul.mubr.msk.f32.vlgmr.msra.gmra.mrb[0].mxu1 %vm736_vm0, %v2400_v13  ;;  %v1149_v33 = vcvt.s32.f32 %v1954_v32  ;;  %v1150_v36 = vcvt.s32.f32 %v1955_v34 }
  0x23   : > { %2010 = vmatmul.mubr.msk.f32.vlgmr.msra.gmra.mrb[0].mxu0 %vm736_vm0, %v2400_v13  ;;  %2036 = vmatprep.mubr.msk.f32.mxu1 %vm2252_vm1, %v2251_v14 }
  0x24   : > { %2031 = vmatprep.mubr.msk.f32.mxu0 %vm736_vm0, %v2377_v0  ;;  %2108 = vmatpush3.bf16.msra.mxu0 %v2105_v28  ;;  %vm1151_vm3 = vcmp.gt.f32.partialorder %v1149_v33, 0.5  ;;  %vm1152_vm4 = vcmp.gt.f32.partialorder %v1150_v36, 0.5 }
  0x25   : > { %2110 = vmatprep.subr.bf16.mxu0 %v2109_v30 }
  0x28   : > { %2112 = vmatpush3.bf16.msra.mxu0 %v2109_v30 }
  0x29   : > { %2044 = vmatprep.subr.mxu0 %v2251_v14 }
  0x2b   : > { %2032 = vmatmul.mubr.msk.f32.vlgmr.msra.gmra.mrb[2].mxu0 %vm736_vm0, %v2400_v13 }
  0x2c   : > { %2046 = vmatprep.mubr.msk.f32.mxu0 %vm2252_vm1, %v2251_v14 }
  0xf5   : > { %v2022_v16 = vpop.f32.mrb[0].mxu1 }
  0xf6   : > { %v895_v18 = vpop.f32.mrb[1].mxu1  ;;  %v2011_v19 = vpop.f32.mrb[0].mxu0  ;;  %v901_v23 = vadd.f32 %v2022_v16, %v1918_v15 }
  0xf7   : > { %v896_v20 = vadd.f32 %v1918_v15, %v895_v18  ;;  %v809_v21 = vpop.f32.mrb[1].mxu0  ;;  %v815_v24 = vadd.f32 %v2011_v19, %v1915_v17 }
  0xf8   : > { %v810_v22 = vadd.f32 %v1915_v17, %v809_v21 }
  0xf9   : > { %2035 = vmatpush3.xpose.msk.msra.mxu1 %vm990_vm2, %v896_v20 }
  0xfa   : > { %2039 = vmatprep.subr.mxu1 %v2251_v14 }
  0xfc   : > { %2037 = vmatmul.mubr.msk.f32.vlgmr.msra.gmra.mrb[2].mxu1 %vm990_vm2, %v810_v22 }
  0xfd   : > { %2040 = vmatpush3.xpose.msk.msra.mxu1 %vm990_vm2, %v901_v23  ;;  %2041 = vmatprep.mubr.msk.f32.mxu1 %vm2252_vm1, %v2251_v14 }
  0xfe   : > { %2049 = vmatprep.subr.mxu1 %v2251_v14  ;;  %v2033_v56 = vpop.f32.mrb[2].mxu0 }
  0xff   : > { %v981_v58 = vpop.f32.mrb[3].mxu0  ;;  %v987_v60 = vadd.f32 %v2033_v56, %v1921_v57 }
 0x100   : > { %2042 = vmatmul.mubr.msk.f32.vlgmr.msra.gmra.mrb[4].mxu1 %vm990_vm2, %v815_v24  ;;  %v982_v59 = vadd.f32 %v1921_v57, %v981_v58 }
 0x101   : > { %2051 = vmatprep.mubr.msk.f32.mxu1 %vm2252_vm1, %v2251_v14  ;;  %2050 = vmatpush3.msra.mxu1 %v987_v60 }
 0x102   : > { %2045 = vmatpush3.msra.mxu0 %v982_v59 }
 0x103   : > { %2054 = vmatprep.subr.mxu0 %v1323_v4 }
 0x1cf   : > { %v1063_v35 = vpop.f32.mrb[2].mxu1 }
 0x1d0   : > { %v1143_v37 = vmul.f32 0.35355338, %v1063_v35  ;;  %v2038_v38 = vpop.f32.mrb[3].mxu1 }
 0x1d2   : > { %v1153_v39 = vsel %vm1151_vm3, -1e+18, %v1143_v37 }
 0x1d3   : > { %v1139_v40 = vpop.f32.mrb[4].mxu1  ;;  %v1155_v41 = vsel %vm990_vm2, %v1153_v39, -inf }
 0x1d4   : > { %v1144_v42 = vmul.f32 0.35355338, %v1139_v40  ;;  %1156 = vmax.xlane.f32.xlu0 %v1155_v41  ;;  %v2043_v43 = vpop.f32.mrb[5].mxu1 }
 0x1d6   : > { %v1154_v44 = vsel %vm1152_vm4, -1e+18, %v1144_v42 }
 0x1d7   : > { %v1158_v45 = vsel %vm990_vm2, %v1154_v44, -inf }
 0x1d8   : > { %1159 = vmax.xlane.f32.xlu0 %v1158_v45 }
 0x261   : > { %v1157_v46 = vpop.xlane.xlu0 %1156 }
 0x262   : > { %v1161_v47 = vsub.f32 %v1153_v39, %v1157_v46 }
 0x264   : > { %v1163_v48 = vmul.f32 1.442695, %v1161_v47 }
 0x265   : > { %v1160_v49 = vpop.xlane.xlu0 %1159 }
 0x266   : > { %2173 = vpow2.f32 %v1163_v48  ;;  %v1162_v50 = vsub.f32 %v1154_v44, %v1160_v49 }
 0x268   : > { %v1165_v51 = vmul.f32 1.442695, %v1162_v50 }
 0x26a   : > { %2175 = vpow2.f32 %v1165_v51 }
 0x270   : > { %v2174_v52 = vpop.eup %2173 }
 0x271   : > { %v1167_v53 = vsel %vm990_vm2, %v2174_v52, 0.0 }
 0x272   : > { %1168 = vadd.xlane.f32.xlu1 %v1167_v53 }
 0x274   : > { %v2176_v54 = vpop.eup %2175 }
 0x275   : > { %v1170_v55 = vsel %vm990_vm2, %v2176_v54, 0.0 }
 0x276   : > { %1171 = vadd.xlane.f32.xlu1 %v1170_v55 }
 0x2ff   : > { %v1169_v61 = vpop.xlane.xlu1 %1168 }
 0x300   : > { %2177 = vrcp.f32 %v1169_v61 }
 0x303   : > { %v1172_v62 = vpop.xlane.xlu1 %1171 }
 0x304   : > { %2179 = vrcp.f32 %v1172_v62 }
 0x30a   : > { %v2178_v63 = vpop.eup %2177 }
 0x30b   : > { %v1174_v1 = vmul.f32 %v2178_v63, %v2174_v52 }
 0x30d   : > { %2047 = vmatmul.mubr.msk.f32.vlgmr.msra.gmra.mrb[4].mxu0 %vm990_vm2, %v1174_v1 }
 0x30e   : > { %v2180_v2 = vpop.eup %2179  ;;  %2055 = vmatpush3.msra.mxu0 %v1323_v4 }
 0x30f   : > { %v1176_v3 = vmul.f32 %v2180_v2, %v2176_v54 }
 0x311   : > { %2052 = vmatmul.mubr.msk.f32.vlgmr.msra.gmra.mrb[6].mxu1 %vm990_vm2, %v1176_v3 }
 0x3e0   : > { %v1246_v5 = vpop.f32.mrb[4].mxu0 }
 0x3e1   : > { %v2048_v6 = vpop.f32.mrb[5].mxu0  ;;  %2056 = vmatprep.mubr.msk.f32.mxu0 %vm990_vm2, %v1246_v5 }
 0x3e4   : > { %v1319_v7 = vpop.f32.mrb[6].mxu1 }
 0x3e5   : > { %v2053_v8 = vpop.f32.mrb[7].mxu1  ;;  %2057 = vmatmul.mubr.msk.f32.vlgmr.msra.gmra.mrb[6].mxu0 %vm990_vm2, %v1319_v7 }
 0x4b3   : > { %1408 = sbr.rel (%p1932_p5) target bundleno = 1210 (0x4ba), region = 96 }
 0x4b8   : > { %v2058_v9 = vpop.f32.mrb[6].mxu0 }
 0x4b9   : > { %v1396_v10 = vpop.f32.mrb[7].mxu0 }
 0x4ba PF: > { %v1411_v12 = vld [vmem:[#allocation2] sm:$0xff]  ;;  %v1412_v14 = vld [vmem:[#allocation2 + $0x8] sm:$0xff]  ;;  %p1933_p6 = scmp.ne.s32.totalorder %s2241_s27, 3 }
 0x4bb   : > { %v1413_v15 = vadd.f32 %v1411_v12, %v1396_v10  ;;  %v1414_v16 = vadd.f32 %v2058_v9, %v1412_v14  ;;  %v1934_v18 = vld [vmem:[%s2572_s9] ss:$0 sm:$0xff] (!%p1933_p6)  ;;  %v1495_v35 = vld [vmem:[%s2575_s12 + $0x8] sm:$0xff] (!%p1933_p6)  ;;  %v1496_v36 = vld [vmem:[%s2575_s12 + $0x10] sm:$0xff] (!%p1933_p6)  ;;  %vm1603_vm9 = vcmask (!%p1933_p6), 523264  }
 0x4bc   : > { %1420 = sbr.rel (%p1933_p6) target bundleno = 2317 (0x90d), region = 100  ;;  %v1497_v38 = vld [vmem:[%s2575_s12 + $0x18] sm:$0xff] (!%p1933_p6)  ;;  %v1588_v40 = vld [vmem:[%s2577_s14] sm:$0xff] (!%p1933_p6)  ;;  %v1589_v41 = vld [vmem:[%s2577_s14 + $0x8] sm:$0xff] (!%p1933_p6) }
 0x4bd   : > { %1415 = vst.msk [vmem:[#allocation2] sm:$0xff] %vm736_vm0, %v1413_v15  ;;  %1416 = vst.msk [vmem:[#allocation2 + $0x8] sm:$0xff] %vm736_vm0, %v1414_v16  ;;  %v2117_v39 = vpack.c.bf16 (!%p1933_p6), %v1497_v38, %v1496_v36  ;;  %v1590_v42 = vld [vmem:[%s2577_s14 + $0x10] sm:$0xff] (!%p1933_p6)  ;;  %v2121_v43 = vpack.c.bf16 (!%p1933_p6), %v1589_v41, %v1588_v40  ;;  %v1591_v44 = vld [vmem:[%s2577_s14 + $0x18] sm:$0xff] (!%p1933_p6) }
 0x4be   : > { %v2125_v45 = vpack.c.bf16 (!%p1933_p6), %v1591_v44, %v1590_v42  ;;  %v1592_v46 = vld [vmem:[%s2577_s14 + $0x20] sm:$0xff] (!%p1933_p6)  ;;  %v1593_v47 = vld [vmem:[%s2577_s14 + $0x28] sm:$0xff] (!%p1933_p6)  ;;  %v1594_v12 = vld [vmem:[%s2577_s14 + $0x30] sm:$0xff] (!%p1933_p6) }
 0x4bf   : > { %2122 = vmatprep.subr.bf16.mxu1 (!%p1933_p6), %v2121_v43  ;;  %v2129_v48 = vpack.c.bf16 (!%p1933_p6), %v1593_v47, %v1592_v46  ;;  %v1935_v2 = vld [vmem:[%s2573_s10] ss:$0 sm:$0xff] (!%p1933_p6)  ;;  %v1595_v14 = vld [vmem:[%s2577_s14 + $0x38] sm:$0xff] (!%p1933_p6) }
 0x4c0   : > { %2124 = vmatpush3.bf16.msra.mxu1 (!%p1933_p6), %v2121_v43  ;;  %v1936_v5 = vld [vmem:[%s2574_s11] ss:$0 sm:$0xff] (!%p1933_p6)  ;;  %v2133_v15 = vpack.c.bf16 (!%p1933_p6), %v1595_v14, %v1594_v12 }
 0x4c1   : > { %2126 = vmatprep.subr.bf16.mxu1 (!%p1933_p6), %v2125_v45  ;;  %v1937_v16 = vld [vmem:[%s2576_s13] ss:$0 sm:$0xff] (!%p1933_p6) }
 0x4c4   : > { %v1421_v17 = vld [vmem:[#allocation2] sm:$0xff]  ;;  %v1422_v19 = vld [vmem:[#allocation2 + $0x8] sm:$0xff]  ;;  %2128 = vmatpush3.bf16.msra.mxu1 %v2125_v45 }
 0x4c5   : > { %v1430_v20 = vadd.f32 %v1934_v18, %v1421_v17  ;;  %v1431_v21 = vadd.f32 %v1934_v18, %v1422_v19  ;;  %2130 = vmatprep.subr.bf16.mxu1 %v2129_v48 }
 0x4c7   : > { %v1432_v22 = vadd.f32 %v1430_v20, %v2377_v0  ;;  %v1433_v23 = vadd.f32 %v1431_v21, %v2400_v13  ;;  %v1494_v13 = vld [vmem:[%s2575_s12] sm:$0xff] }
 0x4c8   : > { %v2113_v37 = vpack.c.bf16 %v1495_v35, %v1494_v13  ;;  %2132 = vmatpush3.bf16.msra.mxu1 %v2129_v48 }
 0x4c9   : > { %v1436_v24 = vsel %vm736_vm0, %v1432_v22, 0.0  ;;  %v1439_v25 = vsel %vm736_vm0, %v1433_v23, 0.0  ;;  %2134 = vmatprep.subr.bf16.mxu1 %v2133_v15 }
 0x4ca   : > { %1437 = vadd.xlane.f32.xlu0 %v1436_v24  ;;  %2114 = vmatprep.subr.bf16.mxu0 %v2113_v37 }
 0x4cb   : > { %2116 = vmatpush3.bf16.msra.mxu0 %v2113_v37 }
 0x4cc   : > { %2118 = vmatprep.subr.bf16.mxu0 %v2117_v39  ;;  %2136 = vmatpush3.bf16.msra.mxu1 %v2133_v15 }
 0x4ce   : > { %1440 = vadd.xlane.f32.xlu0 %v1439_v25 }
 0x4cf   : > { %2120 = vmatpush3.bf16.msra.mxu0 %v2117_v39 }
 0x557   : > { %v1438_v26 = vpop.xlane.xlu0 %1437 }
 0x558   : > { %v1443_v27 = vmul.f32 0.03125, %v1438_v26 }
 0x55a   : > { %v1445_v28 = vsub.f32 %v1432_v22, %v1443_v27 }
 0x55b   : > { %v1441_v29 = vpop.xlane.xlu0 %1440 }
 0x55c   : > { %v1444_v30 = vmul.f32 0.03125, %v1441_v29  ;;  %v1447_v31 = vmul.f32 %v1445_v28, %v1445_v28  ;;  %v1478_v3 = vmul.f32 %v1935_v2, %v1445_v28 }
 0x55e   : > { %v1446_v32 = vsub.f32 %v1433_v23, %v1444_v30  ;;  %v1449_v33 = vsel %vm736_vm0, %v1447_v31, 0.0  ;;  %v1940_v23 = vld [vmem:[%s2578_s15] ss:$0 sm:$0xff] }
 0x55f   : > { %1450 = vadd.xlane.f32.xlu1 %v1449_v33 }
 0x560   : > { %v1448_v34 = vmul.f32 %v1446_v32, %v1446_v32  ;;  %v1479_v7 = vmul.f32 %v1935_v2, %v1446_v32 }
 0x562   : > { %v1452_v0 = vsel %vm736_vm0, %v1448_v34, 0.0 }
 0x563   : > { %1453 = vadd.xlane.f32.xlu1 %v1452_v0 }
 0x5ec   : > { %v1451_v49 = vpop.xlane.xlu1 %1450 }
 0x5ed   : > { %v1456_v50 = vmul.f32 0.032258064, %v1451_v49 }
 0x5ef   : > { %2181 = vrsqrt.f32 %v1456_v50  ;;  %vm1460_vm5 = vcmp.eq.f32.partialorder %v1456_v50, inf  ;;  %v1463_v55 = vand.u32 2147483648, %v1456_v50  ;;  %vm1462_vm6 = vcmp.eq.f32.partialorder %v1456_v50, 0.0 }
 0x5f0   : > { %v1454_v51 = vpop.xlane.xlu1 %1453 }
 0x5f1   : > { %v1457_v52 = vmul.f32 0.032258064, %v1454_v51 }
 0x5f3   : > { %2183 = vrsqrt.f32 %v1457_v52  ;;  %vm1467_vm7 = vcmp.eq.f32.partialorder %v1457_v52, inf  ;;  %v1470_v61 = vand.u32 2147483648, %v1457_v52  ;;  %vm1469_vm8 = vcmp.eq.f32.partialorder %v1457_v52, 0.0 }
 0x5f9   : > { %v2182_v53 = vpop.eup %2181 }
 0x5fa   : > { %v1459_v54 = vmul.f32 %v2182_v53, %v1456_v50 }
 0x5fc   : > { %v1461_v56 = vsel %vm1460_vm5, %v1456_v50, %v1459_v54 }
 0x5fd   : > { %v2184_v57 = vpop.eup %2183  ;;  %v1464_v58 = vsel %vm1462_vm6, %v1463_v55, %v1461_v56  ;;  %v1943_v56 = vld [vmem:[%s2579_s16] ss:$0 sm:$0xff] }
 0x5fe   : > { %v1466_v59 = vmul.f32 %v2184_v57, %v1457_v52  ;;  %v1480_v60 = vadd.f32 1e-06, %v1464_v58 }
 0x600   : > { %v1468_v62 = vsel %vm1467_vm7, %v1457_v52, %v1466_v59  ;;  %2185 = vrcp.f32 %v1480_v60  ;;  %v1944_v60 = vld [vmem:[%s2580_s17] ss:$0 sm:$0xff] }
 0x601   : > { %v1471_v63 = vsel %vm1469_vm8, %v1470_v61, %v1468_v62 }
 0x602   : > { %v1481_v1 = vadd.f32 1e-06, %v1471_v63 }
 0x604   : > { %2187 = vrcp.f32 %v1481_v1 }
 0x60a   : > { %v2186_v4 = vpop.eup %2185 }
 0x60b   : > { %v1483_v6 = vmul.f32 %v2186_v4, %v1478_v3 }
 0x60d   : > { %v1492_v8 = vadd.f32 %v1936_v5, %v1483_v6 }
 0x60e   : > { %v2188_v9 = vpop.eup %2187 }
 0x60f   : > { %v1485_v10 = vmul.f32 %v2188_v9, %v1479_v7  ;;  %2067 = vmatprep.mubr.msk.f32.mxu0 %vm736_vm0, %v1492_v8 }
 0x611   : > { %v1493_v11 = vadd.f32 %v1936_v5, %v1485_v10 }
 0x613   : > { %2068 = vmatmul.mubr.msk.f32.vlgmr.msra.gmra.mrb[0].mxu0 %vm736_vm0, %v1493_v11 }
 0x6e6   : > { %v2069_v17 = vpop.f32.mrb[0].mxu0 }
 0x6e7   : > { %v1583_v18 = vadd.f32 %v2069_v17, %v1937_v16  ;;  %v1577_v19 = vpop.f32.mrb[1].mxu0 }
 0x6e8   : > { %v1578_v20 = vadd.f32 %v1937_v16, %v1577_v19 }
 0x6e9   : > { %v1587_v22 = vmax.f32 %v1583_v18, 0.0 }
 0x6ea   : > { %v1586_v21 = vmax.f32 %v1578_v20, 0.0 }
 0x6ec   : > { %2086 = vmatprep.mubr.msk.f32.mxu1 %vm1603_vm9, %v1586_v21 }
 0x6ed   : > { %2087 = vmatmul.mubr.msk.f32.vlgmr.msra.gmra.mrb[0].mxu1 %vm1603_vm9, %v1587_v22 }
 0x7c0   : > { %v2088_v24 = vpop.f32.mrb[0].mxu1 }
 0x7c1   : > { %v1682_v25 = vadd.f32 %v2088_v24, %v1940_v23  ;;  %v1676_v26 = vpop.f32.mrb[1].mxu1 }
 0x7c2   : > { %v1677_v27 = vadd.f32 %v1940_v23, %v1676_v26 }
 0x7c3   : > { %v1686_v28 = vadd.f32 %v1682_v25, %v1493_v11 }
 0x7c4   : > { %v1685_v29 = vadd.f32 %v1677_v27, %v1492_v8 }
 0x7c5   : > { %v1692_v30 = vsel %vm736_vm0, %v1686_v28, 0.0 }
 0x7c6   : > { %1693 = vadd.xlane.f32.xlu1 %v1692_v30  ;;  %v1689_v31 = vsel %vm736_vm0, %v1685_v29, 0.0 }
 0x7c7   : > { %1690 = vadd.xlane.f32.xlu0 %v1689_v31 }
 0x853   : > { %v1694_v32 = vpop.xlane.xlu1 %1693 }
 0x854   : > { %v1696_v33 = vmul.f32 0.03125, %v1694_v32  ;;  %v1691_v34 = vpop.xlane.xlu0 %1690 }
 0x855   : > { %v1695_v0 = vmul.f32 0.03125, %v1691_v34 }
 0x856   : > { %v1698_v13 = vsub.f32 %v1686_v28, %v1696_v33 }
 0x857   : > { %v1697_v35 = vsub.f32 %v1685_v29, %v1695_v0 }
 0x858   : > { %v1700_v36 = vmul.f32 %v1698_v13, %v1698_v13  ;;  %v1730_v57 = vmul.f32 %v1943_v56, %v1698_v13 }
 0x859   : > { %v1699_v37 = vmul.f32 %v1697_v35, %v1697_v35  ;;  %v1729_v59 = vmul.f32 %v1943_v56, %v1697_v35 }
 0x85a   : > { %v1704_v38 = vsel %vm736_vm0, %v1700_v36, 0.0 }
 0x85b   : > { %1705 = vadd.xlane.f32.xlu1 %v1704_v38  ;;  %v1701_v39 = vsel %vm736_vm0, %v1699_v37, 0.0 }
 0x85c   : > { %1702 = vadd.xlane.f32.xlu0 %v1701_v39 }
 0x8e8   : > { %v1706_v40 = vpop.xlane.xlu1 %1705 }
 0x8e9   : > { %v1708_v41 = vmul.f32 0.032258064, %v1706_v40  ;;  %v1703_v42 = vpop.xlane.xlu0 %1702 }
 0x8ea   : > { %v1707_v43 = vmul.f32 0.032258064, %v1703_v42 }
 0x8eb   : > { %2189 = vrsqrt.f32 %v1708_v41  ;;  %vm1718_vm10 = vcmp.eq.f32.partialorder %v1708_v41, inf  ;;  %v1721_v47 = vand.u32 2147483648, %v1708_v41  ;;  %vm1720_vm11 = vcmp.eq.f32.partialorder %v1708_v41, 0.0 }
 0x8ec   : > { %2191 = vrsqrt.f32 %v1707_v43  ;;  %vm1711_vm12 = vcmp.eq.f32.partialorder %v1707_v43, inf  ;;  %v1714_v50 = vand.u32 2147483648, %v1707_v43  ;;  %vm1713_vm13 = vcmp.eq.f32.partialorder %v1707_v43, 0.0 }
 0x8f5   : > { %v2190_v44 = vpop.eup %2189 }
 0x8f6   : > { %v2192_v45 = vpop.eup %2191  ;;  %v1717_v46 = vmul.f32 %v2190_v44, %v1708_v41 }
 0x8f7   : > { %v1710_v48 = vmul.f32 %v2192_v45, %v1707_v43 }
 0x8f8   : > { %v1719_v49 = vsel %vm1718_vm10, %v1708_v41, %v1717_v46 }
 0x8f9   : > { %v1722_v51 = vsel %vm1720_vm11, %v1721_v47, %v1719_v49  ;;  %v1712_v52 = vsel %vm1711_vm12, %v1707_v43, %v1710_v48 }
 0x8fa   : > { %v1732_v53 = vadd.f32 1e-06, %v1722_v51  ;;  %v1715_v54 = vsel %vm1713_vm13, %v1714_v50, %v1712_v52 }
 0x8fb   : > { %v1731_v55 = vadd.f32 1e-06, %v1715_v54 }
 0x8fc   : > { %2193 = vrcp.f32 %v1732_v53 }
 0x8fd   : > { %2195 = vrcp.f32 %v1731_v55 }
 0x906   : > { %v2194_v58 = vpop.eup %2193 }
 0x907   : > { %v2196_v61 = vpop.eup %2195  ;;  %v1736_v62 = vmul.f32 %v2194_v58, %v1730_v57 }
 0x908   : > { %v1734_v63 = vmul.f32 %v2196_v61, %v1729_v59 }
 0x909   : > { %v1744_v1 = vadd.f32 %v1944_v60, %v1736_v62 }
 0x90a   : > { %v1743_v2 = vadd.f32 %v1944_v60, %v1734_v63 }
 0x90b   : > { %1746 = vst.msk [vmem:[#allocation3 + $0x8] sm:$0xff] %vm736_vm0, %v1744_v1 }
 0x90c   : > { %1745 = vst.msk [vmem:[#allocation3] sm:$0xff] %vm736_vm0, %v1743_v2 }
 0x90d PF: > { %p2528_p7 = scmp.eq.s32.totalorder %s1902_s30, 3  ;;  %s2254_s19 = smov [#allocation3]  }
 0x90e   : > { %s1756_s21 = sshll.u32 %s2254_s19, 4  ;;  %s1757_s21 = int_to_ptr.vmem [resolvable:$true] %s1756_s21 }
 0x90f   : > { %s2197_s1 = scalar_lea.vmem %s1757_s21, 256  ;;  %p2204_p11 = scmp.lt.s32.totalorder %s1757_s21, %s1757_s21 }
 0x910   : > { %p2198_p8 = scmp.ne.s32.totalorder %s1757_s21, %s2197_s1  ;;  %p2205_p12 = scmp.lt.s32.totalorder %s2197_s1, %s2197_s1 }
 0x912   : > { %p2199_p9 = pnand %p2198_p8, %p2528_p7  ;;  %p2206_p13 = por %p2205_p12, %p2204_p11 }
 0x914   : > { %p2200_p10 = pneg %p2199_p9 }
 0x916   : > { %p2207_p0 = pnand %p2206_p13, %p2200_p10 }
 0x918   : > { %2210 = shalt.err (!%p2207_p0)
}
 0x919   : > { %s2211_s30 = scalar_lea.hbm %s2581_s18, 256 }
 0x91a   : > { %p2212_p1 = scmp.ne.s32.totalorder %s2581_s18, %s2211_s30  ;;  %p2217_p4 = scmp.lt.u32.totalorder %s2211_s30, %s2581_s18 }
 0x91c   : > { %p2213_p2 = pnand %p2212_p1, %p2528_p7 }
 0x91e   : > { %p2214_p3 = pneg %p2213_p2 }
 0x920   : > { %p2219_p5 = pnand %p2217_p4, %p2214_p3 }
 0x922   : > { %2222 = shalt.err (!%p2219_p5)
}
 0x923   : > { %s2255_s19 = smov 128   ;;  %s2256_s1 = smov 8  }
 0x924   : > { %2138 = dma.vmem_to_hbm [thread:$0]  (%p2528_p7), %s1757_s21, 256, %s2581_s18, [#allocation4], %s2255_s19, %s2255_s19, %s2256_s1  }
 0x925   : > { %2236 = dma.done.wait (%p2528_p7), [#allocation4], 256  }
 0x926   : > { %2238 = vsyncadd (%p2528_p7), [#allocation4], 4294967040 }
 0x927 PF: > { %s29_s29 = sadd.s32 1, %s2249_s29   ;;  %s2590_s27 = smov %s2245_s28 }
 0x928   : > { %p26_p6 = scmp.ge.s32.totalorder %s29_s29, 6   ;;  %s2591_s28 = smov %s2593_s0 }
 0x92a   :  { %28 = sbr.rel (!%p26_p6) target bundleno = 6 (0x6), region = 152 }
 0x931   :  { %1772 = vsyncpa [#allocation4], 1 }
 0x932   :  { %1774 = vsyncpa [#allocation4 + $0x1], 1 }

// kernel: tpu_custom_call.1
= control target key start
LH: loop header
LB: loop body
LE: loop exit
PB: predicated region body
PF: predicated region fallthrough
CT: control target
= control target key end

     0   :  { %s2563_s0 = inlined_call_operand.vmem [shape: f32[2,8,32], index: 0, kind: input, shape index: {}]   ;;  %s2564_s1 = inlined_call_operand.vmem [shape: s8[2,8,8], index: 1, kind: input, shape index: {}]   ;;  %s2565_s2 = inlined_call_operand.vmem [shape: f32[4,32,8], index: 2, kind: input, shape index: {}]   ;;  %s2566_s3 = inlined_call_operand.vmem [shape: f32[4,1,8], index: 3, kind: input, shape index: {}]   ;;  %s2567_s4 = inlined_call_operand.vmem [shape: f32[4,32,8], index: 4, kind: input, shape index: {}]   ;;  %s2568_s5 = inlined_call_operand.vmem [shape: f32[4,1,8], index: 5, kind: input, shape index: {}]   ;;  %s2569_s6 = inlined_call_operand.vmem [shape: f32[4,32,8], index: 6, kind: input, shape index: {}]   ;;  %s2570_s7 = inlined_call_operand.vmem [shape: f32[4,1,8], index: 7, kind: input, shape index: {}]   ;;  %s2571_s8 = inlined_call_operand.vmem [shape: f32[4,8,32], index: 8, kind: input, shape index: {}]   ;;  %s2572_s9 = inlined_call_operand.vmem [shape: f32[1,32], index: 9, kind: input, shape index: {}]   ;;  %s2573_s10 = inlined_call_operand.vmem [shape: f32[1,32], index: 10, kind: input, shape index: {}]   ;;  %s2574_s11 = inlined_call_operand.vmem [shape: f32[1,32], index: 11, kind: input, shape index: {}]   ;;  %s2575_s12 = inlined_call_operand.vmem [shape: f32[32,64], index: 12, kind: input, shape index: {}]   ;;  %s2576_s13 = inlined_call_operand.vmem [shape: f32[1,64], index: 13, kind: input, shape index: {}]   ;;  %s2577_s14 = inlined_call_operand.vmem [shape: f32[64,32], index: 14, kind: input, shape index: {}]   ;;  %s2578_s15 = inlined_call_operand.vmem [shape: f32[1,32], index: 15, kind: input, shape index: {}]   ;;  %s2579_s16 = inlined_call_operand.vmem [shape: f32[1,32], index: 16, kind: input, shape index: {}]   ;;  %s2580_s17 = inlined_call_operand.vmem [shape: f32[1,32], index: 17, kind: input, shape index: {}]   ;;  %s2581_s18 = inlined_call_operand.hbm [shape: f32[2,8,32], index: 18, kind: output, shape index: {}]  }
   0x1   :  { %2583 = sst [smem:[#allocation6_spill]] %s2563_s0 }
   0x2   :  { %2584 = sst [smem:[#allocation7_spill]] %s2564_s1 }
   0x3   :  { %2585 = sst [smem:[#allocation8_spill]] %s2565_s2 }
   0x4   :  { %23 = vsyncpa [#allocation4], 0  ;;  %s2352_s27 = smov 0   ;;  %s2354_s28 = smov 0  }
   0x5   :  { %s2356_s29 = smov 0  }
   0x6 LB: > { %s1902_s30 = sadd.s32 4294967295, %s2249_s29   ;;  %s38_s0 = sadd.s32 1, %s2245_s28  ;;  %s2249_s29 = sphi %s2356_s29, %s29_s29   ;;  %s2245_s28 = sphi %s2354_s28, %s2591_s28   ;;  %s2241_s27 = sphi %s2352_s27, %s2590_s27  }
   0x7   : > { %p39_p0 = scmp.ge.s32.totalorder %s38_s0, 4  ;;  %p1907_p1 = scmp.ge.s32.totalorder %s2249_s29, 1 }
   0x8   : > { %p600_p2 = scmp.lt.s32.totalorder %s2249_s29, 5 }
   0x9   : > { %s2593_s0 = smov (%p39_p0, %s38_s0), 0 }
   0xa   : > { %p601_p3 = pnand %p1907_p1, %p600_p2 }
   0xb   : > { %p694_p4 = scmp.lt.s32.totalorder (!%p601_p3), %s2241_s27, 3  ;;  %s2586_s20 = sld [smem:[#allocation6_spill]] (!%p601_p3)  ;;  %vm736_vm0 = vcmask (!%p601_p3), 261120   ;;  %v2251_v14 = vmov (!%p601_p3), 0.0   ;;  %vm2252_vm1 = vmmov (!%p601_p3), 0   ;;  %vm990_vm2 = vcmask (!%p601_p3), 64512  }
   0xc   : > { %604 = sbr.rel (%p601_p3) target bundleno = 2343 (0x927), region = 92  ;;  %s2587_s19 = sld [smem:[#allocation8_spill]] (!%p601_p3) }
   0xd   : > { %p1932_p5 = scmp.ne.s32.totalorder (!%p601_p3), %s2241_s27, 0 }
  0x11   : > { %v2377_v0 = vld [vmem:[%s2586_s20] sm:$0xff] (!%p601_p3)  ;;  %v2400_v13 = vld [vmem:[%s2586_s20 + $0x8] sm:$0xff] (!%p601_p3) }
  0x12   : > { %2020 = vmatprep.mubr.msk.f32.mxu1 (!%p601_p3), %vm736_vm0, %v2377_v0  ;;  %2009 = vmatprep.mubr.msk.f32.mxu0 (!%p601_p3), %vm736_vm0, %v2377_v0 }
  0x13   : > { %s2384_s21 = scalar_select %p694_p4, %s2241_s27, 3 }
  0x15   : > { %s2387_s22 = sshll.u32 %s2384_s21, 5  ;;  %s709_s26 = scalar_lea.vmem %s2568_s5, %s2384_s21 }
  0x16   : > { %s706_s24 = scalar_lea.vmem %s2567_s4, %s2387_s22  ;;  %s698_s1 = scalar_lea.vmem %s2587_s19, %s2387_s22  ;;  %v1918_v15 = vld [vmem:[%s709_s26] ss:$0 sm:$0xff] }
  0x17   : > { %v818_v1 = vld [vmem:[%s706_s24] sm:$0xff]  ;;  %v819_v2 = vld [vmem:[%s706_s24 + $0x8] sm:$0xff]  ;;  %v820_v6 = vld [vmem:[%s706_s24 + $0x10] sm:$0xff]  ;;  %s701_s2 = scalar_lea.vmem %s2566_s3, %s2384_s21  ;;  %s714_s25 = scalar_lea.vmem %s2569_s6, %s2387_s22 }
  0x18   : > { %v725_v3 = vld [vmem:[%s698_s1] sm:$0xff]  ;;  %v2097_v4 = vpack.c.bf16 %v819_v2, %v818_v1  ;;  %v726_v5 = vld [vmem:[%s698_s1 + $0x8] sm:$0xff]  ;;  %v821_v7 = vld [vmem:[%s706_s24 + $0x18] sm:$0xff]  ;;  %s717_s23 = scalar_lea.vmem %s2570_s7, %s2384_s21  ;;  %s1914_s24 = sshll.u32 %s2384_s21, 3 }
  0x19   : > { %v2089_v8 = vpack.c.bf16 %v726_v5, %v725_v3  ;;  %v2101_v9 = vpack.c.bf16 %v821_v7, %v820_v6  ;;  %v727_v10 = vld [vmem:[%s698_s1 + $0x10] sm:$0xff]  ;;  %v728_v11 = vld [vmem:[%s698_s1 + $0x18] sm:$0xff]  ;;  %v1915_v17 = vld [vmem:[%s701_s2] ss:$0 sm:$0xff]  ;;  %s2588_s1 = sld [smem:[#allocation7_spill]]  ;;  %s721_s19 = scalar_lea.vmem %s2571_s8, %s1914_s24 }
  0x1a   : > { %2098 = vmatprep.subr.bf16.mxu1 %v2097_v4  ;;  %v2093_v12 = vpack.c.bf16 %v728_v11, %v727_v10  ;;  %v904_v25 = vld [vmem:[%s714_s25] sm:$0xff]  ;;  %v905_v26 = vld [vmem:[%s714_s25 + $0x8] sm:$0xff]  ;;  %v906_v27 = vld [vmem:[%s714_s25 + $0x10] sm:$0xff]  ;;  %v2253_v11 = vmov (!%p1932_p5), 0.0  }
  0x1b   : > { %2100 = vmatpush3.bf16.msra.mxu1 %v2097_v4  ;;  %2090 = vmatprep.subr.bf16.mxu0 %v2089_v8  ;;  %v2105_v28 = vpack.c.bf16 %v905_v26, %v904_v25  ;;  %v907_v29 = vld [vmem:[%s714_s25 + $0x18] sm:$0xff]  ;;  %v1921_v57 = vld [vmem:[%s717_s23] ss:$0 sm:$0xff]  ;;  %1409 = vst.msk [vmem:[#allocation2] sm:$0xff] (!%p1932_p5), %vm736_vm0, %v2253_v11  ;;  %1410 = vst.msk [vmem:[#allocation2 + $0x8] sm:$0xff] (!%p1932_p5), %vm736_vm0, %v2253_v11 }
  0x1c   : > { %2092 = vmatpush3.bf16.msra.mxu0 %v2089_v8  ;;  %2102 = vmatprep.subr.bf16.mxu1 %v2101_v9  ;;  %v2109_v30 = vpack.c.bf16 %v907_v29, %v906_v27  ;;  %v1323_v4 = vld [vmem:[%s721_s19] sm:$0xff] }
  0x1d   : > { %2094 = vmatprep.subr.bf16.mxu0 %v2093_v12 }
  0x1f   : > { %2104 = vmatpush3.bf16.msra.mxu1 %v2101_v9  ;;  %v1953_v31 = vld [vmem:[%s2588_s1] sm:$0xf]  }
  0x20   : > { %2096 = vmatpush3.bf16.msra.mxu0 %v2093_v12  ;;  %2034 = vmatprep.subr.mxu1 %v2251_v14  ;;  %v1954_v32 = vunpack.c.0.s8 %v1953_v31  ;;  %v1955_v34 = vunpack.c.1.s8 %v1953_v31 }
  0x21   : > { %2106 = vmatprep.subr.bf16.mxu0 %v2105_v28 }
  0x22   : > { %2021 = vmatmul.mubr.msk.f32.vlgmr.msra.gmra.mrb[0].mxu1 %vm736_vm0, %v2400_v13  ;;  %v1149_v33 = vcvt.s32.f32 %v1954_v32  ;;  %v1150_v36 = vcvt.s32.f32 %v1955_v34 }
  0x23   : > { %2010 = vmatmul.mubr.msk.f32.vlgmr.msra.gmra.mrb[0].mxu0 %vm736_vm0, %v2400_v13  ;;  %2036 = vmatprep.mubr.msk.f32.mxu1 %vm2252_vm1, %v2251_v14 }
  0x24   : > { %2031 = vmatprep.mubr.msk.f32.mxu0 %vm736_vm0, %v2377_v0  ;;  %2108 = vmatpush3.bf16.msra.mxu0 %v2105_v28  ;;  %vm1151_vm3 = vcmp.gt.f32.partialorder %v1149_v33, 0.5  ;;  %vm1152_vm4 = vcmp.gt.f32.partialorder %v1150_v36, 0.5 }
  0x25   : > { %2110 = vmatprep.subr.bf16.mxu0 %v2109_v30 }
  0x28   : > { %2112 = vmatpush3.bf16.msra.mxu0 %v2109_v30 }
  0x29   : > { %2044 = vmatprep.subr.mxu0 %v2251_v14 }
  0x2b   : > { %2032 = vmatmul.mubr.msk.f32.vlgmr.msra.gmra.mrb[2].mxu0 %vm736_vm0, %v2400_v13 }
  0x2c   : > { %2046 = vmatprep.mubr.msk.f32.mxu0 %vm2252_vm1, %v2251_v14 }
  0xf5   : > { %v2022_v16 = vpop.f32.mrb[0].mxu1 }
  0xf6   : > { %v895_v18 = vpop.f32.mrb[1].mxu1  ;;  %v2011_v19 = vpop.f32.mrb[0].mxu0  ;;  %v901_v23 = vadd.f32 %v2022_v16, %v1918_v15 }
  0xf7   : > { %v896_v20 = vadd.f32 %v1918_v15, %v895_v18  ;;  %v809_v21 = vpop.f32.mrb[1].mxu0  ;;  %v815_v24 = vadd.f32 %v2011_v19, %v1915_v17 }
  0xf8   : > { %v810_v22 = vadd.f32 %v1915_v17, %v809_v21 }
  0xf9   : > { %2035 = vmatpush3.xpose.msk.msra.mxu1 %vm990_vm2, %v896_v20 }
  0xfa   : > { %2039 = vmatprep.subr.mxu1 %v2251_v14 }
  0xfc   : > { %2037 = vmatmul.mubr.msk.f32.vlgmr.msra.gmra.mrb[2].mxu1 %vm990_vm2, %v810_v22 }
  0xfd   : > { %2040 = vmatpush3.xpose.msk.msra.mxu1 %vm990_vm2, %v901_v23  ;;  %2041 = vmatprep.mubr.msk.f32.mxu1 %vm2252_vm1, %v2251_v14 }
  0xfe   : > { %2049 = vmatprep.subr.mxu1 %v2251_v14  ;;  %v2033_v56 = vpop.f32.mrb[2].mxu0 }
  0xff   : > { %v981_v58 = vpop.f32.mrb[3].mxu0  ;;  %v987_v60 = vadd.f32 %v2033_v56, %v1921_v57 }
 0x100   : > { %2042 = vmatmul.mubr.msk.f32.vlgmr.msra.gmra.mrb[4].mxu1 %vm990_vm2, %v815_v24  ;;  %v982_v59 = vadd.f32 %v1921_v57, %v981_v58 }
 0x101   : > { %2051 = vmatprep.mubr.msk.f32.mxu1 %vm2252_vm1, %v2251_v14  ;;  %2050 = vmatpush3.msra.mxu1 %v987_v60 }
 0x102   : > { %2045 = vmatpush3.msra.mxu0 %v982_v59 }
 0x103   : > { %2054 = vmatprep.subr.mxu0 %v1323_v4 }
 0x1cf   : > { %v1063_v35 = vpop.f32.mrb[2].mxu1 }
 0x1d0   : > { %v1143_v37 = vmul.f32 0.35355338, %v1063_v35  ;;  %v2038_v38 = vpop.f32.mrb[3].mxu1 }
 0x1d2   : > { %v1153_v39 = vsel %vm1151_vm3, -1e+18, %v1143_v37 }
 0x1d3   : > { %v1139_v40 = vpop.f32.mrb[4].mxu1  ;;  %v1155_v41 = vsel %vm990_vm2, %v1153_v39, -inf }
 0x1d4   : > { %v1144_v42 = vmul.f32 0.35355338, %v1139_v40  ;;  %1156 = vmax.xlane.f32.xlu0 %v1155_v41  ;;  %v2043_v43 = vpop.f32.mrb[5].mxu1 }
 0x1d6   : > { %v1154_v44 = vsel %vm1152_vm4, -1e+18, %v1144_v42 }
 0x1d7   : > { %v1158_v45 = vsel %vm990_vm2, %v1154_v44, -inf }
 0x1d8   : > { %1159 = vmax.xlane.f32.xlu0 %v1158_v45 }
 0x261   : > { %v1157_v46 = vpop.xlane.xlu0 %1156 }
 0x262   : > { %v1161_v47 = vsub.f32 %v1153_v39, %v1157_v46 }
 0x264   : > { %v1163_v48 = vmul.f32 1.442695, %v1161_v47 }
 0x265   : > { %v1160_v49 = vpop.xlane.xlu0 %1159 }
 0x266   : > { %2173 = vpow2.f32 %v1163_v48  ;;  %v1162_v50 = vsub.f32 %v1154_v44, %v1160_v49 }
 0x268   : > { %v1165_v51 = vmul.f32 1.442695, %v1162_v50 }
 0x26a   : > { %2175 = vpow2.f32 %v1165_v51 }
 0x270   : > { %v2174_v52 = vpop.eup %2173 }
 0x271   : > { %v1167_v53 = vsel %vm990_vm2, %v2174_v52, 0.0 }
 0x272   : > { %1168 = vadd.xlane.f32.xlu1 %v1167_v53 }
 0x274   : > { %v2176_v54 = vpop.eup %2175 }
 0x275   : > { %v1170_v55 = vsel %vm990_vm2, %v2176_v54, 0.0 }
 0x276   : > { %1171 = vadd.xlane.f32.xlu1 %v1170_v55 }
 0x2ff   : > { %v1169_v61 = vpop.xlane.xlu1 %1168 }
 0x300   : > { %2177 = vrcp.f32 %v1169_v61 }
 0x303   : > { %v1172_v62 = vpop.xlane.xlu1 %1171 }
 0x304   : > { %2179 = vrcp.f32 %v1172_v62 }
 0x30a   : > { %v2178_v63 = vpop.eup %2177 }
 0x30b   : > { %v1174_v1 = vmul.f32 %v2178_v63, %v2174_v52 }
 0x30d   : > { %2047 = vmatmul.mubr.msk.f32.vlgmr.msra.gmra.mrb[4].mxu0 %vm990_vm2, %v1174_v1 }
 0x30e   : > { %v2180_v2 = vpop.eup %2179  ;;  %2055 = vmatpush3.msra.mxu0 %v1323_v4 }
 0x30f   : > { %v1176_v3 = vmul.f32 %v2180_v2, %v2176_v54 }
 0x311   : > { %2052 = vmatmul.mubr.msk.f32.vlgmr.msra.gmra.mrb[6].mxu1 %vm990_vm2, %v1176_v3 }
 0x3e0   : > { %v1246_v5 = vpop.f32.mrb[4].mxu0 }
 0x3e1   : > { %v2048_v6 = vpop.f32.mrb[5].mxu0  ;;  %2056 = vmatprep.mubr.msk.f32.mxu0 %vm990_vm2, %v1246_v5 }
 0x3e4   : > { %v1319_v7 = vpop.f32.mrb[6].mxu1 }
 0x3e5   : > { %v2053_v8 = vpop.f32.mrb[7].mxu1  ;;  %2057 = vmatmul.mubr.msk.f32.vlgmr.msra.gmra.mrb[6].mxu0 %vm990_vm2, %v1319_v7 }
 0x4b3   : > { %1408 = sbr.rel (%p1932_p5) target bundleno = 1210 (0x4ba), region = 96 }
 0x4b8   : > { %v2058_v9 = vpop.f32.mrb[6].mxu0 }
 0x4b9   : > { %v1396_v10 = vpop.f32.mrb[7].mxu0 }
 0x4ba PF: > { %v1411_v12 = vld [vmem:[#allocation2] sm:$0xff]  ;;  %v1412_v14 = vld [vmem:[#allocation2 + $0x8] sm:$0xff]  ;;  %p1933_p6 = scmp.ne.s32.totalorder %s2241_s27, 3 }
 0x4bb   : > { %v1413_v15 = vadd.f32 %v1411_v12, %v1396_v10  ;;  %v1414_v16 = vadd.f32 %v2058_v9, %v1412_v14  ;;  %v1934_v18 = vld [vmem:[%s2572_s9] ss:$0 sm:$0xff] (!%p1933_p6)  ;;  %v1495_v35 = vld [vmem:[%s2575_s12 + $0x8] sm:$0xff] (!%p1933_p6)  ;;  %v1496_v36 = vld [vmem:[%s2575_s12 + $0x10] sm:$0xff] (!%p1933_p6)  ;;  %vm1603_vm9 = vcmask (!%p1933_p6), 523264  }
 0x4bc   : > { %1420 = sbr.rel (%p1933_p6) target bundleno = 2317 (0x90d), region = 100  ;;  %v1497_v38 = vld [vmem:[%s2575_s12 + $0x18] sm:$0xff] (!%p1933_p6)  ;;  %v1588_v40 = vld [vmem:[%s2577_s14] sm:$0xff] (!%p1933_p6)  ;;  %v1589_v41 = vld [vmem:[%s2577_s14 + $0x8] sm:$0xff] (!%p1933_p6) }
 0x4bd   : > { %1415 = vst.msk [vmem:[#allocation2] sm:$0xff] %vm736_vm0, %v1413_v15  ;;  %1416 = vst.msk [vmem:[#allocation2 + $0x8] sm:$0xff] %vm736_vm0, %v1414_v16  ;;  %v2117_v39 = vpack.c.bf16 (!%p1933_p6), %v1497_v38, %v1496_v36  ;;  %v1590_v42 = vld [vmem:[%s2577_s14 + $0x10] sm:$0xff] (!%p1933_p6)  ;;  %v2121_v43 = vpack.c.bf16 (!%p1933_p6), %v1589_v41, %v1588_v40  ;;  %v1591_v44 = vld [vmem:[%s2577_s14 + $0x18] sm:$0xff] (!%p1933_p6) }
 0x4be   : > { %v2125_v45 = vpack.c.bf16 (!%p1933_p6), %v1591_v44, %v1590_v42  ;;  %v1592_v46 = vld [vmem:[%s2577_s14 + $0x20] sm:$0xff] (!%p1933_p6)  ;;  %v1593_v47 = vld [vmem:[%s2577_s14 + $0x28] sm:$0xff] (!%p1933_p6)  ;;  %v1594_v12 = vld [vmem:[%s2577_s14 + $0x30] sm:$0xff] (!%p1933_p6) }
 0x4bf   : > { %2122 = vmatprep.subr.bf16.mxu1 (!%p1933_p6), %v2121_v43  ;;  %v2129_v48 = vpack.c.bf16 (!%p1933_p6), %v1593_v47, %v1592_v46  ;;  %v1935_v2 = vld [vmem:[%s2573_s10] ss:$0 sm:$0xff] (!%p1933_p6)  ;;  %v1595_v14 = vld [vmem:[%s2577_s14 + $0x38] sm:$0xff] (!%p1933_p6) }
 0x4c0   : > { %2124 = vmatpush3.bf16.msra.mxu1 (!%p1933_p6), %v2121_v43  ;;  %v1936_v5 = vld [vmem:[%s2574_s11] ss:$0 sm:$0xff] (!%p1933_p6)  ;;  %v2133_v15 = vpack.c.bf16 (!%p1933_p6), %v1595_v14, %v1594_v12 }
 0x4c1   : > { %2126 = vmatprep.subr.bf16.mxu1 (!%p1933_p6), %v2125_v45  ;;  %v1937_v16 = vld [vmem:[%s2576_s13] ss:$0 sm:$0xff] (!%p1933_p6) }
 0x4c4   : > { %v1421_v17 = vld [vmem:[#allocation2] sm:$0xff]  ;;  %v1422_v19 = vld [vmem:[#allocation2 + $0x8] sm:$0xff]  ;;  %2128 = vmatpush3.bf16.msra.mxu1 %v2125_v45 }
 0x4c5   : > { %v1430_v20 = vadd.f32 %v1934_v18, %v1421_v17  ;;  %v1431_v21 = vadd.f32 %v1934_v18, %v1422_v19  ;;  %2130 = vmatprep.subr.bf16.mxu1 %v2129_v48 }
 0x4c7   : > { %v1432_v22 = vadd.f32 %v1430_v20, %v2377_v0  ;;  %v1433_v23 = vadd.f32 %v1431_v21, %v2400_v13  ;;  %v1494_v13 = vld [vmem:[%s2575_s12] sm:$0xff] }
 0x4c8   : > { %v2113_v37 = vpack.c.bf16 %v1495_v35, %v1494_v13  ;;  %2132 = vmatpush3.bf16.msra.mxu1 %v2129_v48 }
 0x4c9   : > { %v1436_v24 = vsel %vm736_vm0, %v1432_v22, 0.0  ;;  %v1439_v25 = vsel %vm736_vm0, %v1433_v23, 0.0  ;;  %2134 = vmatprep.subr.bf16.mxu1 %v2133_v15 }
 0x4ca   : > { %1437 = vadd.xlane.f32.xlu0 %v1436_v24  ;;  %2114 = vmatprep.subr.bf16.mxu0 %v2113_v37 }
 0x4cb   : > { %2116 = vmatpush3.bf16.msra.mxu0 %v2113_v37 }
 0x4cc   : > { %2118 = vmatprep.subr.bf16.mxu0 %v2117_v39  ;;  %2136 = vmatpush3.bf16.msra.mxu1 %v2133_v15 }
 0x4ce   : > { %1440 = vadd.xlane.f32.xlu0 %v1439_v25 }
 0x4cf   : > { %2120 = vmatpush3.bf16.msra.mxu0 %v2117_v39 }
 0x557   : > { %v1438_v26 = vpop.xlane.xlu0 %1437 }
 0x558   : > { %v1443_v27 = vmul.f32 0.03125, %v1438_v26 }
 0x55a   : > { %v1445_v28 = vsub.f32 %v1432_v22, %v1443_v27 }
 0x55b   : > { %v1441_v29 = vpop.xlane.xlu0 %1440 }
 0x55c   : > { %v1444_v30 = vmul.f32 0.03125, %v1441_v29  ;;  %v1447_v31 = vmul.f32 %v1445_v28, %v1445_v28  ;;  %v1478_v3 = vmul.f32 %v1935_v2, %v1445_v28 }
 0x55e   : > { %v1446_v32 = vsub.f32 %v1433_v23, %v1444_v30  ;;  %v1449_v33 = vsel %vm736_vm0, %v1447_v31, 0.0  ;;  %v1940_v23 = vld [vmem:[%s2578_s15] ss:$0 sm:$0xff] }
 0x55f   : > { %1450 = vadd.xlane.f32.xlu1 %v1449_v33 }
 0x560   : > { %v1448_v34 = vmul.f32 %v1446_v32, %v1446_v32  ;;  %v1479_v7 = vmul.f32 %v1935_v2, %v1446_v32 }
 0x562   : > { %v1452_v0 = vsel %vm736_vm0, %v1448_v34, 0.0 }
 0x563   : > { %1453 = vadd.xlane.f32.xlu1 %v1452_v0 }
 0x5ec   : > { %v1451_v49 = vpop.xlane.xlu1 %1450 }
 0x5ed   : > { %v1456_v50 = vmul.f32 0.032258064, %v1451_v49 }
 0x5ef   : > { %2181 = vrsqrt.f32 %v1456_v50  ;;  %vm1460_vm5 = vcmp.eq.f32.partialorder %v1456_v50, inf  ;;  %v1463_v55 = vand.u32 2147483648, %v1456_v50  ;;  %vm1462_vm6 = vcmp.eq.f32.partialorder %v1456_v50, 0.0 }
 0x5f0   : > { %v1454_v51 = vpop.xlane.xlu1 %1453 }
 0x5f1   : > { %v1457_v52 = vmul.f32 0.032258064, %v1454_v51 }
 0x5f3   : > { %2183 = vrsqrt.f32 %v1457_v52  ;;  %vm1467_vm7 = vcmp.eq.f32.partialorder %v1457_v52, inf  ;;  %v1470_v61 = vand.u32 2147483648, %v1457_v52  ;;  %vm1469_vm8 = vcmp.eq.f32.partialorder %v1457_v52, 0.0 }
 0x5f9   : > { %v2182_v53 = vpop.eup %2181 }
 0x5fa   : > { %v1459_v54 = vmul.f32 %v2182_v53, %v1456_v50 }
 0x5fc   : > { %v1461_v56 = vsel %vm1460_vm5, %v1456_v50, %v1459_v54 }
 0x5fd   : > { %v2184_v57 = vpop.eup %2183  ;;  %v1464_v58 = vsel %vm1462_vm6, %v1463_v55, %v1461_v56  ;;  %v1943_v56 = vld [vmem:[%s2579_s16] ss:$0 sm:$0xff] }
 0x5fe   : > { %v1466_v59 = vmul.f32 %v2184_v57, %v1457_v52  ;;  %v1480_v60 = vadd.f32 1e-06, %v1464_v58 }
 0x600   : > { %v1468_v62 = vsel %vm1467_vm7, %v1457_v52, %v1466_v59  ;;  %2185 = vrcp.f32 %v1480_v60  ;;  %v1944_v60 = vld [vmem:[%s2580_s17] ss:$0 sm:$0xff] }
 0x601   : > { %v1471_v63 = vsel %vm1469_vm8, %v1470_v61, %v1468_v62 }
 0x602   : > { %v1481_v1 = vadd.f32 1e-06, %v1471_v63 }
 0x604   : > { %2187 = vrcp.f32 %v1481_v1 }
 0x60a   : > { %v2186_v4 = vpop.eup %2185 }
 0x60b   : > { %v1483_v6 = vmul.f32 %v2186_v4, %v1478_v3 }
 0x60d   : > { %v1492_v8 = vadd.f32 %v1936_v5, %v1483_v6 }
 0x60e   : > { %v2188_v9 = vpop.eup %2187 }
 0x60f   : > { %v1485_v10 = vmul.f32 %v2188_v9, %v1479_v7  ;;  %2067 = vmatprep.mubr.msk.f32.mxu0 %vm736_vm0, %v1492_v8 }
 0x611   : > { %v1493_v11 = vadd.f32 %v1936_v5, %v1485_v10 }
 0x613   : > { %2068 = vmatmul.mubr.msk.f32.vlgmr.msra.gmra.mrb[0].mxu0 %vm736_vm0, %v1493_v11 }
 0x6e6   : > { %v2069_v17 = vpop.f32.mrb[0].mxu0 }
 0x6e7   : > { %v1583_v18 = vadd.f32 %v2069_v17, %v1937_v16  ;;  %v1577_v19 = vpop.f32.mrb[1].mxu0 }
 0x6e8   : > { %v1578_v20 = vadd.f32 %v1937_v16, %v1577_v19 }
 0x6e9   : > { %v1587_v22 = vmax.f32 %v1583_v18, 0.0 }
 0x6ea   : > { %v1586_v21 = vmax.f32 %v1578_v20, 0.0 }
 0x6ec   : > { %2086 = vmatprep.mubr.msk.f32.mxu1 %vm1603_vm9, %v1586_v21 }
 0x6ed   : > { %2087 = vmatmul.mubr.msk.f32.vlgmr.msra.gmra.mrb[0].mxu1 %vm1603_vm9, %v1587_v22 }
 0x7c0   : > { %v2088_v24 = vpop.f32.mrb[0].mxu1 }
 0x7c1   : > { %v1682_v25 = vadd.f32 %v2088_v24, %v1940_v23  ;;  %v1676_v26 = vpop.f32.mrb[1].mxu1 }
 0x7c2   : > { %v1677_v27 = vadd.f32 %v1940_v23, %v1676_v26 }
 0x7c3   : > { %v1686_v28 = vadd.f32 %v1682_v25, %v1493_v11 }
 0x7c4   : > { %v1685_v29 = vadd.f32 %v1677_v27, %v1492_v8 }
 0x7c5   : > { %v1692_v30 = vsel %vm736_vm0, %v1686_v28, 0.0 }
 0x7c6   : > { %1693 = vadd.xlane.f32.xlu1 %v1692_v30  ;;  %v1689_v31 = vsel %vm736_vm0, %v1685_v29, 0.0 }
 0x7c7   : > { %1690 = vadd.xlane.f32.xlu0 %v1689_v31 }
 0x853   : > { %v1694_v32 = vpop.xlane.xlu1 %1693 }
 0x854   : > { %v1696_v33 = vmul.f32 0.03125, %v1694_v32  ;;  %v1691_v34 = vpop.xlane.xlu0 %1690 }
 0x855   : > { %v1695_v0 = vmul.f32 0.03125, %v1691_v34 }
 0x856   : > { %v1698_v13 = vsub.f32 %v1686_v28, %v1696_v33 }
 0x857   : > { %v1697_v35 = vsub.f32 %v1685_v29, %v1695_v0 }
 0x858   : > { %v1700_v36 = vmul.f32 %v1698_v13, %v1698_v13  ;;  %v1730_v57 = vmul.f32 %v1943_v56, %v1698_v13 }
 0x859   : > { %v1699_v37 = vmul.f32 %v1697_v35, %v1697_v35  ;;  %v1729_v59 = vmul.f32 %v1943_v56, %v1697_v35 }
 0x85a   : > { %v1704_v38 = vsel %vm736_vm0, %v1700_v36, 0.0 }
 0x85b   : > { %1705 = vadd.xlane.f32.xlu1 %v1704_v38  ;;  %v1701_v39 = vsel %vm736_vm0, %v1699_v37, 0.0 }
 0x85c   : > { %1702 = vadd.xlane.f32.xlu0 %v1701_v39 }
 0x8e8   : > { %v1706_v40 = vpop.xlane.xlu1 %1705 }
 0x8e9   : > { %v1708_v41 = vmul.f32 0.032258064, %v1706_v40  ;;  %v1703_v42 = vpop.xlane.xlu0 %1702 }
 0x8ea   : > { %v1707_v43 = vmul.f32 0.032258064, %v1703_v42 }
 0x8eb   : > { %2189 = vrsqrt.f32 %v1708_v41  ;;  %vm1718_vm10 = vcmp.eq.f32.partialorder %v1708_v41, inf  ;;  %v1721_v47 = vand.u32 2147483648, %v1708_v41  ;;  %vm1720_vm11 = vcmp.eq.f32.partialorder %v1708_v41, 0.0 }
 0x8ec   : > { %2191 = vrsqrt.f32 %v1707_v43  ;;  %vm1711_vm12 = vcmp.eq.f32.partialorder %v1707_v43, inf  ;;  %v1714_v50 = vand.u32 2147483648, %v1707_v43  ;;  %vm1713_vm13 = vcmp.eq.f32.partialorder %v1707_v43, 0.0 }
 0x8f5   : > { %v2190_v44 = vpop.eup %2189 }
 0x8f6   : > { %v2192_v45 = vpop.eup %2191  ;;  %v1717_v46 = vmul.f32 %v2190_v44, %v1708_v41 }
 0x8f7   : > { %v1710_v48 = vmul.f32 %v2192_v45, %v1707_v43 }
 0x8f8   : > { %v1719_v49 = vsel %vm1718_vm10, %v1708_v41, %v1717_v46 }
 0x8f9   : > { %v1722_v51 = vsel %vm1720_vm11, %v1721_v47, %v1719_v49  ;;  %v1712_v52 = vsel %vm1711_vm12, %v1707_v43, %v1710_v48 }
 0x8fa   : > { %v1732_v53 = vadd.f32 1e-06, %v1722_v51  ;;  %v1715_v54 = vsel %vm1713_vm13, %v1714_v50, %v1712_v52 }
 0x8fb   : > { %v1731_v55 = vadd.f32 1e-06, %v1715_v54 }
 0x8fc   : > { %2193 = vrcp.f32 %v1732_v53 }
 0x8fd   : > { %2195 = vrcp.f32 %v1731_v55 }
 0x906   : > { %v2194_v58 = vpop.eup %2193 }
 0x907   : > { %v2196_v61 = vpop.eup %2195  ;;  %v1736_v62 = vmul.f32 %v2194_v58, %v1730_v57 }
 0x908   : > { %v1734_v63 = vmul.f32 %v2196_v61, %v1729_v59 }
 0x909   : > { %v1744_v1 = vadd.f32 %v1944_v60, %v1736_v62 }
 0x90a   : > { %v1743_v2 = vadd.f32 %v1944_v60, %v1734_v63 }
 0x90b   : > { %1746 = vst.msk [vmem:[#allocation3 + $0x8] sm:$0xff] %vm736_vm0, %v1744_v1 }
 0x90c   : > { %1745 = vst.msk [vmem:[#allocation3] sm:$0xff] %vm736_vm0, %v1743_v2 }
 0x90d PF: > { %p2528_p7 = scmp.eq.s32.totalorder %s1902_s30, 3  ;;  %s2254_s19 = smov [#allocation3]  }
 0x90e   : > { %s1756_s21 = sshll.u32 %s2254_s19, 4  ;;  %s1757_s21 = int_to_ptr.vmem [resolvable:$true] %s1756_s21 }
 0x90f   : > { %s2197_s1 = scalar_lea.vmem %s1757_s21, 256  ;;  %p2204_p11 = scmp.lt.s32.totalorder %s1757_s21, %s1757_s21 }
 0x910   : > { %p2198_p8 = scmp.ne.s32.totalorder %s1757_s21, %s2197_s1  ;;  %p2205_p12 = scmp.lt.s32.totalorder %s2197_s1, %s2197_s1 }
 0x912   : > { %p2199_p9 = pnand %p2198_p8, %p2528_p7  ;;  %p2206_p13 = por %p2205_p12, %p2204_p11 }
 0x914   : > { %p2200_p10 = pneg %p2199_p9 }
 0x916   : > { %p2207_p0 = pnand %p2206_p13, %p2200_p10 }
 0x918   : > { %2210 = shalt.err (!%p2207_p0)
}
 0x919   : > { %s2211_s30 = scalar_lea.hbm %s2581_s18, 256 }
 0x91a   : > { %p2212_p1 = scmp.ne.s32.totalorder %s2581_s18, %s2211_s30  ;;  %p2217_p4 = scmp.lt.u32.totalorder %s2211_s30, %s2581_s18 }
 0x91c   : > { %p2213_p2 = pnand %p2212_p1, %p2528_p7 }
 0x91e   : > { %p2214_p3 = pneg %p2213_p2 }
 0x920   : > { %p2219_p5 = pnand %p2217_p4, %p2214_p3 }
 0x922   : > { %2222 = shalt.err (!%p2219_p5)
}
 0x923   : > { %s2255_s19 = smov 128   ;;  %s2256_s1 = smov 8  }
 0x924   : > { %2138 = dma.vmem_to_hbm [thread:$0]  (%p2528_p7), %s1757_s21, 256, %s2581_s18, [#allocation4], %s2255_s19, %s2255_s19, %s2256_s1  }
 0x925   : > { %2236 = dma.done.wait (%p2528_p7), [#allocation4], 256  }
 0x926   : > { %2238 = vsyncadd (%p2528_p7), [#allocation4], 4294967040 }
 0x927 PF: > { %s29_s29 = sadd.s32 1, %s2249_s29   ;;  %s2590_s27 = smov %s2245_s28 }
 0x928   : > { %p26_p6 = scmp.ge.s32.totalorder %s29_s29, 6   ;;  %s2591_s28 = smov %s2593_s0 }
 0x92a   :  { %28 = sbr.rel (!%p26_p6) target bundleno = 6 (0x6), region = 152 }
 0x931   :  { %1772 = vsyncpa [#allocation4], 1 }
 0x932   :  { %1774 = vsyncpa [#allocation4 + $0x1], 1 }

</bundles_post_ra>
